<compile_context>
chip_gen: v6e
topology: v6e:2x2x1
jax: 0.10.0
libtpu: 0.0.40
codegen_flags: <defaults>
</compile_context>

<pallas_src>
import functools
import math

import jax
import jax.numpy as jnp
from jax.experimental import pallas as pl
from jax.experimental.pallas import tpu as pltpu


MID = 32  # self.mid_feats == mid_feats_drugsens == mid_feats_drugs == ... == 32


def _softplus(x):
    # matches torch.nn.Softplus(beta=1, threshold=20)
    return jnp.where(x > 20.0, x, jnp.log1p(jnp.exp(jnp.minimum(x, 20.0))))


# ----------------------------- Pallas kernel ---------------------------------


def ode_kernel(xpert_ref, winit_ref, wstep_ref, cst_ref, out_ref, *, mid, hid):
    """linear_input -> conv1 -> 3 unrolled RK4 steps -> conv2, one row tile.

    xpert_ref : (TR, 2)          rows = batch*proteins for this tile
    winit_ref : (MID, H+MID)     bf16  [w_c1@w1 | w_c1@w_c2]
    wstep_ref : (H,   H+MID)     bf16  [w2@w1   | w2@w_c2]
    cst_ref   : (40,  H+MID)     f32   w_in rows / b_in / fused bias rows
    out_ref   : (TR, 3*MID)      conv2 outputs for t=1,2,3, lane-packed
    """
    hm = hid + mid

    # Constants: read once, 8-row-aligned slots (biases b1/b_c1/b_c2 already
    # folded into b_init; only b_step remains per dot).
    w_in0 = cst_ref[0:1, :mid]
    w_in1 = cst_ref[8:9, :mid]
    b_in = cst_ref[16:17, :mid]
    b_init = cst_ref[24:25, :hm]
    b_step = cst_ref[32:33, :hm]

    w_init = winit_ref[...]          # bf16
    w_step = wstep_ref[...]          # bf16

    # linear_input + Softplus.  K=2 matmul done as two lane-broadcast FMAs on
    # the VPU (an MXU pass at K=2 costs as many pushes as K=128).
    x0 = xpert_ref[:, 0:1]
    x1 = xpert_ref[:, 1:2]
    u = _softplus(x0 * w_in0 + x1 * w_in1 + b_in)                # (TR, MID) f32

    # conv1 fused with the first w1 / w_c2 applications:
    #   g0 = [h0@w1 + b1 | h0@w_c2 + b_c2],   h0 = u@w_c1 + b_c1
    g = jnp.dot(u.astype(jnp.bfloat16), w_init,
                preferred_element_type=jnp.float32) + b_init     # (TR, H+MID)

    convs = []
    for _t in range(3):              # t_span = [0,1,2,3]; keep states t=1,2,3
        ga = g[:, :hid]              # prefix lane slice (cheap)

        # d_i = [k_i@w1 | k_i@w_c2] ; k_i = f(h + c_i * k_{i-1})
        z = _softplus(ga)
        d = jnp.dot(z.astype(jnp.bfloat16), w_step,
                    preferred_element_type=jnp.float32) + b_step
        acc = d

        z = _softplus(ga + 0.5 * d[:, :hid])
        d = jnp.dot(z.astype(jnp.bfloat16), w_step,
                    preferred_element_type=jnp.float32) + b_step
        acc = acc + 2.0 * d

        z = _softplus(ga + 0.5 * d[:, :hid])
        d = jnp.dot(z.astype(jnp.bfloat16), w_step,
                    preferred_element_type=jnp.float32) + b_step
        acc = acc + 2.0 * d

        z = _softplus(ga + d[:, :hid])
        d = jnp.dot(z.astype(jnp.bfloat16), w_step,
                    preferred_element_type=jnp.float32) + b_step
        acc = acc + d

        g = g + acc * (1.0 / 6.0)
        convs.append(g[:, hid:])     # conv2 output at this timestep, (TR, MID)

    # Single lane-dense store per tile.
    out_ref[...] = jnp.concatenate(convs, axis=-1)               # (TR, 3*MID)


# ----------------------------- fused operands ---------------------------------


def _build_operands(params):
    """Precompute fused (N-packed) weights / bias rows at trace time."""
    hid = params["w1"].shape[0]
    hm = hid + MID
    w1, w2 = params["w1"], params["w2"]
    w_c1, w_c2 = params["w_c1"], params["w_c2"]
    b1, b2 = params["b1"], params["b2"]
    b_c1, b_c2 = params["b_c1"], params["b_c2"]

    # Fused matrices built in f32, stored bf16 for single-pass MXU dots.
    w_init = jnp.concatenate([w_c1 @ w1, w_c1 @ w_c2], axis=1).astype(jnp.bfloat16)
    w_step = jnp.concatenate([w2 @ w1, w2 @ w_c2], axis=1).astype(jnp.bfloat16)

    b_init = jnp.concatenate([b_c1 @ w1 + b1, b_c1 @ w_c2 + b_c2], axis=1)  # (1, hm)
    b_step = jnp.concatenate([b2 @ w1, b2 @ w_c2], axis=1)                  # (1, hm)

    cst = jnp.zeros((40, hm), jnp.float32)
    cst = cst.at[0, :MID].set(params["w_in"][0])
    cst = cst.at[8, :MID].set(params["w_in"][1])
    cst = cst.at[16, :MID].set(params["b_in"][0])
    cst = cst.at[24, :].set(b_init[0])
    cst = cst.at[32, :].set(b_step[0])
    return w_init, w_step, cst


# ----------------------------- device info / tiling ---------------------------


def _num_tensorcores():
    """Best-effort TensorCores-per-device (megacore chips -> 2)."""
    try:
        info = pltpu.get_tpu_info()
        for name in ("num_cores", "core_count", "num_tensorcores", "tensorcore_count"):
            v = getattr(info, name, None)
            if v:
                return int(v)
    except Exception:
        pass
    try:
        kind = jax.devices()[0].device_kind.lower()
        if any(tag in kind for tag in ("v4", "v5p", "v7")):
            return 2
    except Exception:
        pass
    return 1


def _vmem_capacity_bytes():
    try:
        info = pltpu.get_tpu_info()
        for name in ("vmem_capacity_bytes", "vmem_size_bytes", "vmem_bytes"):
            v = getattr(info, name, None)
            if v:
                return int(v)
    except Exception:
        pass
    return 64 * 1024 * 1024  # conservative default (v7x per-core)


def _choose_row_tiling(bs, P, num_cores, target_rows=2048):
    """Pick batches-per-tile.  Only force >=2 grid steps when 2 TCs exist;
    awkward batch sizes are handled by padding, not by shrinking the tile."""
    q = 8 // math.gcd(P, 8)                     # bpt granularity so TR % 8 == 0
    bpt = max(1, min(bs, max(1, target_rows // max(P, 1))))
    if num_cores >= 2 and bs >= 2 * q:
        bpt = min(bpt, bs // 2)                 # let both TensorCores get work
    bpt = max(q, (bpt // q) * q)
    if bpt >= bs:
        return bs, 1                            # single tile: full-dim block
    return bpt, -(-bs // bpt)                   # (bpt, n_tiles); pad bs up


# ----------------------------- wrapper ----------------------------------------


def init_params(key, pro_feats, hidden_feats, drug_feature_feats, out_feats=1):
    P, H, D = pro_feats, hidden_feats, drug_feature_feats
    ks = jax.random.split(key, 20)

    def u(k, shape, fan_in):
        s = 1.0 / math.sqrt(fan_in)
        return jax.random.uniform(k, shape, jnp.float32, -s, s)

    return dict(
        w_in=u(ks[0], (2, MID), 2),              b_in=u(ks[1], (1, MID), 2),
        w_c1=u(ks[2], (MID, H), MID),            b_c1=u(ks[3], (1, H), MID),
        w1=u(ks[4], (H, H), H),                  b1=u(ks[5], (1, H), H),
        w2=u(ks[6], (H, H), H),                  b2=u(ks[7], (1, H), H),
        w_c2=u(ks[8], (H, MID), H),              b_c2=u(ks[9], (1, MID), H),
        w_fin=u(ks[10], (MID, out_feats), MID),  b_fin=u(ks[11], (1, out_feats), MID),
        w_ds=u(ks[12], (2 * P, MID), 2 * P),     b_ds=u(ks[13], (1, MID), 2 * P),
        w_dr=u(ks[14], (2 * D, MID), 2 * D),     b_dr=u(ks[15], (1, MID), 2 * D),
        w_f1=u(ks[16], (2 * MID, MID), 2 * MID), b_f1=u(ks[17], (1, MID), 2 * MID),
        w_f2=u(ks[18], (MID, 1), MID),           b_f2=u(ks[19], (1, 1), MID),
    )


def ppode_forward(x, pert, fp_phA, fp_phB, params, time_stamp_predict_drug="6"):
    bs, P, _ = x.shape
    D = fp_phA.shape[1]
    H = params["w1"].shape[0]
    R = bs * P

    num_cores = _num_tensorcores()
    bpt, n_tiles = _choose_row_tiling(bs, P, num_cores)
    bs_pad = bpt * n_tiles
    TR = bpt * P

    xpert = jnp.concatenate([x, pert], axis=-1).reshape(R, 2)
    if bs_pad != bs:
        xpert = jnp.pad(xpert, ((0, (bs_pad - bs) * P), (0, 0)))

    w_init, w_step, cst = _build_operands(params)
    kernel = functools.partial(ode_kernel, mid=MID, hid=H)

    # VMEM budget: padded-lane tile bytes x (2x in + 2x out double buffers +
    # ~8 live f32 temporaries), 2x headroom, capped against physical VMEM.
    est = TR * 128 * 4 * 12
    vmem_limit = int(min(max(2 * est, 16 << 20),
                         int(0.65 * _vmem_capacity_bytes())))

    conv_flat = pl.pallas_call(
        kernel,
        out_shape=jax.ShapeDtypeStruct((bs_pad * P, 3 * MID), jnp.float32),
        grid=(n_tiles,),
        in_specs=[
            pl.BlockSpec((TR, 2), lambda i: (i, 0)),
            pl.BlockSpec(w_init.shape, lambda i: (0, 0)),
            pl.BlockSpec(w_step.shape, lambda i: (0, 0)),
            pl.BlockSpec(cst.shape, lambda i: (0, 0)),
        ],
        out_specs=pl.BlockSpec((TR, 3 * MID), lambda i: (i, 0)),
        compiler_params=pltpu.CompilerParams(
            dimension_semantics=("parallel",),
            vmem_limit_bytes=vmem_limit,
        ),
    )(xpert, w_init, w_step, cst)

    # (R, 3*MID) -> (bs, 3, P, MID): lane-dense kernel stores, one XLA transpose.
    conv4 = conv_flat[:R].reshape(bs, P, 3, MID).transpose(0, 2, 1, 3)
    emb_ode_conv = conv4.reshape(bs * 3, P, MID)

    # layer_final in XLA: degenerate (MID, 1) matmul kept out of the kernel.
    y = jnp.einsum("btpm,mo->btpo", conv4, params["w_fin"]) + params["b_fin"]

    # ---- pheno head (plain jnp; tiny matmuls fused by XLA) --------------------
    if time_stamp_predict_drug == "6":
        y_sel = y[:, 0, :, 0]
    elif time_stamp_predict_drug == "24":
        y_sel = y[:, 1, :, 0]
    elif time_stamp_predict_drug == "48":
        y_sel = y[:, 2, :, 0]
    else:
        # TODO(synk): 'all timesteps' branch (kernel_size=4 drugsens conv) not wired.
        y_sel = y[:, 0, :, 0]

    # cat([x, y_sel], -1) -> (bs, P, 2); Conv1d(P, 32, k=2) == matmul over 2P axis
    xy_flat = jnp.stack([x[:, :, 0], y_sel], axis=-1).reshape(bs, 2 * P)
    fp_flat = jnp.concatenate([fp_phA, fp_phB], axis=-1).reshape(bs, 2 * D)

    a = jax.nn.relu(xy_flat @ params["w_ds"] + params["b_ds"])
    b = jax.nn.relu(fp_flat @ params["w_dr"] + params["b_dr"])
    c = jax.nn.relu(jnp.concatenate([a, b], axis=-1) @ params["w_f1"] + params["b_f1"])
    logits = c @ params["w_f2"] + params["b_f2"]
    pheno = jax.nn.sigmoid(logits)[:, 0]

    return y, pheno, emb_ode_conv


# ----------------------------- pure-jnp reference ------------------------------


def _reference_conv4(x, pert, params):
    """Unfused f32 reference for the ODE/conv path (validates the fusion)."""
    bs, P, _ = x.shape
    xp = jnp.concatenate([x, pert], axis=-1).reshape(bs * P, 2)
    u = _softplus(xp @ params["w_in"] + params["b_in"])
    h = u @ params["w_c1"] + params["b_c1"]

    def f(z):
        return _softplus(z @ params["w1"] + params["b1"]) @ params["w2"] + params["b2"]

    convs = []
    for _ in range(3):
        k1 = f(h)
        k2 = f(h + 0.5 * k1)
        k3 = f(h + 0.5 * k2)
        k4 = f(h + k3)
        h = h + (k1 + 2.0 * k2 + 2.0 * k3 + k4) / 6.0
        convs.append(h @ params["w_c2"] + params["b_c2"])
    conv = jnp.stack(convs, axis=1)                    # (bs*P, 3, MID)
    return conv.reshape(bs, P, 3, MID).transpose(0, 2, 1, 3)


# ----------------------------- main -------------------------------------------


if __name__ == "__main__":
    bs = 2
    pro_feats = 16          # P
    hidden_feats = 32       # H
    out_feats = 1
    drug_feature_feats = 8  # D
    time_stamp_predict_drug = "6"

    key = jax.random.PRNGKey(0)
    k_par, kx, kp, ka, kb = jax.random.split(key, 5)

    params = init_params(k_par, pro_feats, hidden_feats, drug_feature_feats, out_feats)

    x = jax.random.normal(kx, (bs, pro_feats, 1), jnp.float32)
    pert = jax.random.normal(kp, (bs, pro_feats, 1), jnp.float32)
    fp_phA = jax.random.normal(ka, (bs, drug_feature_feats, 1), jnp.float32)
    fp_phB = jax.random.normal(kb, (bs, drug_feature_feats, 1), jnp.float32)

    fwd = jax.jit(
        functools.partial(ppode_forward, time_stamp_predict_drug=time_stamp_predict_drug)
    )
    y, pheno, emb_ode_conv = fwd(x, pert, fp_phA, fp_phB, params)
    jax.block_until_ready((y, pheno, emb_ode_conv))

    assert y.shape == (bs, 3, pro_feats, out_feats)
    assert pheno.shape == (bs,)
    assert emb_ode_conv.shape == (bs * 3, pro_feats, MID)
    assert bool(jnp.all(jnp.isfinite(y)))
    assert bool(jnp.all(jnp.isfinite(pheno)))
    assert bool(jnp.all(jnp.isfinite(emb_ode_conv)))

    # Validate bf16 + weight-fusion kernel against the unfused f32 reference.
    ref = _reference_conv4(x, pert, params).reshape(bs * 3, pro_feats, MID)
    diff = emb_ode_conv - ref
    rel = jnp.sqrt(jnp.sum(diff * diff)) / (jnp.sqrt(jnp.sum(ref * ref)) + 1e-6)
    assert float(rel) < 0.1, f"relative error too large: {float(rel)}"

    print("KERNEL_OK")
</pallas_src>

<mosaic_0001>
module attributes {stable_mosaic.version = 11 : i64} {
  func.func @ode_kernel(%arg0: i32, %arg1: memref<32x2xf32, #tpu.memory_space<vmem>>, %arg2: memref<32x64xbf16, #tpu.memory_space<vmem>>, %arg3: memref<32x64xbf16, #tpu.memory_space<vmem>>, %arg4: memref<40x64xf32, #tpu.memory_space<vmem>>, %arg5: memref<32x96xf32, #tpu.memory_space<vmem>>) attributes {dimension_semantics = [#tpu.dimension_semantics<parallel>], iteration_bounds = array<i64: 1>, scalar_prefetch = 0 : i64, scratch_operands = 0 : i64, tpu.core_type = #tpu.core_type<tc>, window_params = [{transform_indices = @transform_0, window_bounds = array<i64: 32, 2>}, {pipeline_mode = #tpu.pipeline_mode<synchronous>, transform_indices = @transform_1, window_bounds = array<i64: 32, 64>}, {pipeline_mode = #tpu.pipeline_mode<synchronous>, transform_indices = @transform_2, window_bounds = array<i64: 32, 64>}, {pipeline_mode = #tpu.pipeline_mode<synchronous>, transform_indices = @transform_3, window_bounds = array<i64: 40, 64>}, {transform_indices = @transform_4, window_bounds = array<i64: 32, 96>}]} {
    %c0 = arith.constant 0 : index
    %c0_0 = arith.constant 0 : index
    %0 = vector.load %arg4[%c0, %c0_0] : memref<40x64xf32, #tpu.memory_space<vmem>>, vector<1x32xf32>
    %c8 = arith.constant 8 : index
    %c0_1 = arith.constant 0 : index
    %1 = vector.load %arg4[%c8, %c0_1] : memref<40x64xf32, #tpu.memory_space<vmem>>, vector<1x32xf32>
    %c16 = arith.constant 16 : index
    %c0_2 = arith.constant 0 : index
    %2 = vector.load %arg4[%c16, %c0_2] : memref<40x64xf32, #tpu.memory_space<vmem>>, vector<1x32xf32>
    %c24 = arith.constant 24 : index
    %c0_3 = arith.constant 0 : index
    %3 = vector.load %arg4[%c24, %c0_3] : memref<40x64xf32, #tpu.memory_space<vmem>>, vector<1x64xf32>
    %c32 = arith.constant 32 : index
    %c0_4 = arith.constant 0 : index
    %4 = vector.load %arg4[%c32, %c0_4] : memref<40x64xf32, #tpu.memory_space<vmem>>, vector<1x64xf32>
    %c0_5 = arith.constant 0 : index
    %c0_6 = arith.constant 0 : index
    %5 = vector.load %arg2[%c0_5, %c0_6] : memref<32x64xbf16, #tpu.memory_space<vmem>>, vector<32x64xbf16>
    %c0_7 = arith.constant 0 : index
    %c0_8 = arith.constant 0 : index
    %6 = vector.load %arg3[%c0_7, %c0_8] : memref<32x64xbf16, #tpu.memory_space<vmem>>, vector<32x64xbf16>
    %c0_9 = arith.constant 0 : index
    %c0_10 = arith.constant 0 : index
    %7 = vector.load %arg1[%c0_9, %c0_10] : memref<32x2xf32, #tpu.memory_space<vmem>>, vector<32x1xf32>
    %c0_11 = arith.constant 0 : index
    %c1 = arith.constant 1 : index
    %8 = vector.load %arg1[%c0_11, %c1] : memref<32x2xf32, #tpu.memory_space<vmem>>, vector<32x1xf32>
    %9 = vector.broadcast %7 : vector<32x1xf32> to vector<32x32xf32>
    %10 = vector.broadcast %0 : vector<1x32xf32> to vector<32x32xf32>
    %11 = arith.mulf %9, %10 : vector<32x32xf32>
    %12 = vector.broadcast %8 : vector<32x1xf32> to vector<32x32xf32>
    %13 = vector.broadcast %1 : vector<1x32xf32> to vector<32x32xf32>
    %14 = arith.mulf %12, %13 : vector<32x32xf32>
    %15 = arith.addf %11, %14 : vector<32x32xf32>
    %16 = vector.broadcast %2 : vector<1x32xf32> to vector<32x32xf32>
    %17 = arith.addf %15, %16 : vector<32x32xf32>
    %cst = arith.constant 2.000000e+01 : f32
    %18 = vector.broadcast %cst : f32 to vector<32x32xf32>
    %19 = arith.cmpf ogt, %17, %18 : vector<32x32xf32>
    %cst_12 = arith.constant 2.000000e+01 : f32
    %20 = vector.broadcast %cst_12 : f32 to vector<32x32xf32>
    %21 = arith.minimumf %17, %20 : vector<32x32xf32>
    %22 = math.exp %21 : vector<32x32xf32>
    %23 = math.log1p %22 : vector<32x32xf32>
    %24 = arith.select %19, %17, %23 : vector<32x32xi1>, vector<32x32xf32>
    %25 = arith.truncf %24 : vector<32x32xf32> to vector<32x32xbf16>
    %cst_13 = arith.constant dense<0.000000e+00> : vector<32x64xf32>
    %26 = tpu.matmul %25, %5, %cst_13 {dimension_numbers = #tpu.dot_dimension_numbers<[1], [0], [0], [1], [0, 0, 1, 1], [], []>} : vector<32x32xbf16>, vector<32x64xbf16>, vector<32x64xf32> -> vector<32x64xf32>
    %27 = vector.broadcast %3 : vector<1x64xf32> to vector<32x64xf32>
    %28 = arith.addf %26, %27 : vector<32x64xf32>
    %29 = vector.extract_strided_slice %28 {offsets = [0, 0], sizes = [32, 32], strides = [1, 1]} : vector<32x64xf32> to vector<32x32xf32>
    %cst_14 = arith.constant 2.000000e+01 : f32
    %30 = vector.broadcast %cst_14 : f32 to vector<32x32xf32>
    %31 = arith.cmpf ogt, %29, %30 : vector<32x32xf32>
    %cst_15 = arith.constant 2.000000e+01 : f32
    %32 = vector.broadcast %cst_15 : f32 to vector<32x32xf32>
    %33 = arith.minimumf %29, %32 : vector<32x32xf32>
    %34 = math.exp %33 : vector<32x32xf32>
    %35 = math.log1p %34 : vector<32x32xf32>
    %36 = arith.select %31, %29, %35 : vector<32x32xi1>, vector<32x32xf32>
    %37 = arith.truncf %36 : vector<32x32xf32> to vector<32x32xbf16>
    %cst_16 = arith.constant dense<0.000000e+00> : vector<32x64xf32>
    %38 = tpu.matmul %37, %6, %cst_16 {dimension_numbers = #tpu.dot_dimension_numbers<[1], [0], [0], [1], [0, 0, 1, 1], [], []>} : vector<32x32xbf16>, vector<32x64xbf16>, vector<32x64xf32> -> vector<32x64xf32>
    %39 = vector.broadcast %4 : vector<1x64xf32> to vector<32x64xf32>
    %40 = arith.addf %38, %39 : vector<32x64xf32>
    %41 = vector.extract_strided_slice %40 {offsets = [0, 0], sizes = [32, 32], strides = [1, 1]} : vector<32x64xf32> to vector<32x32xf32>
    %cst_17 = arith.constant 5.000000e-01 : f32
    %42 = vector.broadcast %cst_17 : f32 to vector<32x32xf32>
    %43 = arith.mulf %42, %41 : vector<32x32xf32>
    %44 = arith.addf %29, %43 : vector<32x32xf32>
    %cst_18 = arith.constant 2.000000e+01 : f32
    %45 = vector.broadcast %cst_18 : f32 to vector<32x32xf32>
    %46 = arith.cmpf ogt, %44, %45 : vector<32x32xf32>
    %cst_19 = arith.constant 2.000000e+01 : f32
    %47 = vector.broadcast %cst_19 : f32 to vector<32x32xf32>
    %48 = arith.minimumf %44, %47 : vector<32x32xf32>
    %49 = math.exp %48 : vector<32x32xf32>
    %50 = math.log1p %49 : vector<32x32xf32>
    %51 = arith.select %46, %44, %50 : vector<32x32xi1>, vector<32x32xf32>
    %52 = arith.truncf %51 : vector<32x32xf32> to vector<32x32xbf16>
    %cst_20 = arith.constant dense<0.000000e+00> : vector<32x64xf32>
    %53 = tpu.matmul %52, %6, %cst_20 {dimension_numbers = #tpu.dot_dimension_numbers<[1], [0], [0], [1], [0, 0, 1, 1], [], []>} : vector<32x32xbf16>, vector<32x64xbf16>, vector<32x64xf32> -> vector<32x64xf32>
    %54 = vector.broadcast %4 : vector<1x64xf32> to vector<32x64xf32>
    %55 = arith.addf %53, %54 : vector<32x64xf32>
    %cst_21 = arith.constant 2.000000e+00 : f32
    %56 = vector.broadcast %cst_21 : f32 to vector<32x64xf32>
    %57 = arith.mulf %56, %55 : vector<32x64xf32>
    %58 = arith.addf %40, %57 : vector<32x64xf32>
    %59 = vector.extract_strided_slice %55 {offsets = [0, 0], sizes = [32, 32], strides = [1, 1]} : vector<32x64xf32> to vector<32x32xf32>
    %cst_22 = arith.constant 5.000000e-01 : f32
    %60 = vector.broadcast %cst_22 : f32 to vector<32x32xf32>
    %61 = arith.mulf %60, %59 : vector<32x32xf32>
    %62 = arith.addf %29, %61 : vector<32x32xf32>
    %cst_23 = arith.constant 2.000000e+01 : f32
    %63 = vector.broadcast %cst_23 : f32 to vector<32x32xf32>
    %64 = arith.cmpf ogt, %62, %63 : vector<32x32xf32>
    %cst_24 = arith.constant 2.000000e+01 : f32
    %65 = vector.broadcast %cst_24 : f32 to vector<32x32xf32>
    %66 = arith.minimumf %62, %65 : vector<32x32xf32>
    %67 = math.exp %66 : vector<32x32xf32>
    %68 = math.log1p %67 : vector<32x32xf32>
    %69 = arith.select %64, %62, %68 : vector<32x32xi1>, vector<32x32xf32>
    %70 = arith.truncf %69 : vector<32x32xf32> to vector<32x32xbf16>
    %cst_25 = arith.constant dense<0.000000e+00> : vector<32x64xf32>
    %71 = tpu.matmul %70, %6, %cst_25 {dimension_numbers = #tpu.dot_dimension_numbers<[1], [0], [0], [1], [0, 0, 1, 1], [], []>} : vector<32x32xbf16>, vector<32x64xbf16>, vector<32x64xf32> -> vector<32x64xf32>
    %72 = vector.broadcast %4 : vector<1x64xf32> to vector<32x64xf32>
    %73 = arith.addf %71, %72 : vector<32x64xf32>
    %cst_26 = arith.constant 2.000000e+00 : f32
    %74 = vector.broadcast %cst_26 : f32 to vector<32x64xf32>
    %75 = arith.mulf %74, %73 : vector<32x64xf32>
    %76 = arith.addf %58, %75 : vector<32x64xf32>
    %77 = vector.extract_strided_slice %73 {offsets = [0, 0], sizes = [32, 32], strides = [1, 1]} : vector<32x64xf32> to vector<32x32xf32>
    %78 = arith.addf %29, %77 : vector<32x32xf32>
    %cst_27 = arith.constant 2.000000e+01 : f32
    %79 = vector.broadcast %cst_27 : f32 to vector<32x32xf32>
    %80 = arith.cmpf ogt, %78, %79 : vector<32x32xf32>
    %cst_28 = arith.constant 2.000000e+01 : f32
    %81 = vector.broadcast %cst_28 : f32 to vector<32x32xf32>
    %82 = arith.minimumf %78, %81 : vector<32x32xf32>
    %83 = math.exp %82 : vector<32x32xf32>
    %84 = math.log1p %83 : vector<32x32xf32>
    %85 = arith.select %80, %78, %84 : vector<32x32xi1>, vector<32x32xf32>
    %86 = arith.truncf %85 : vector<32x32xf32> to vector<32x32xbf16>
    %cst_29 = arith.constant dense<0.000000e+00> : vector<32x64xf32>
    %87 = tpu.matmul %86, %6, %cst_29 {dimension_numbers = #tpu.dot_dimension_numbers<[1], [0], [0], [1], [0, 0, 1, 1], [], []>} : vector<32x32xbf16>, vector<32x64xbf16>, vector<32x64xf32> -> vector<32x64xf32>
    %88 = vector.broadcast %4 : vector<1x64xf32> to vector<32x64xf32>
    %89 = arith.addf %87, %88 : vector<32x64xf32>
    %90 = arith.addf %76, %89 : vector<32x64xf32>
    %cst_30 = arith.constant 0.166666672 : f32
    %91 = vector.broadcast %cst_30 : f32 to vector<32x64xf32>
    %92 = arith.mulf %90, %91 : vector<32x64xf32>
    %93 = arith.addf %28, %92 : vector<32x64xf32>
    %94 = vector.extract_strided_slice %93 {offsets = [0, 32], sizes = [32, 32], strides = [1, 1]} : vector<32x64xf32> to vector<32x32xf32>
    %95 = vector.extract_strided_slice %93 {offsets = [0, 0], sizes = [32, 32], strides = [1, 1]} : vector<32x64xf32> to vector<32x32xf32>
    %cst_31 = arith.constant 2.000000e+01 : f32
    %96 = vector.broadcast %cst_31 : f32 to vector<32x32xf32>
    %97 = arith.cmpf ogt, %95, %96 : vector<32x32xf32>
    %cst_32 = arith.constant 2.000000e+01 : f32
    %98 = vector.broadcast %cst_32 : f32 to vector<32x32xf32>
    %99 = arith.minimumf %95, %98 : vector<32x32xf32>
    %100 = math.exp %99 : vector<32x32xf32>
    %101 = math.log1p %100 : vector<32x32xf32>
    %102 = arith.select %97, %95, %101 : vector<32x32xi1>, vector<32x32xf32>
    %103 = arith.truncf %102 : vector<32x32xf32> to vector<32x32xbf16>
    %cst_33 = arith.constant dense<0.000000e+00> : vector<32x64xf32>
    %104 = tpu.matmul %103, %6, %cst_33 {dimension_numbers = #tpu.dot_dimension_numbers<[1], [0], [0], [1], [0, 0, 1, 1], [], []>} : vector<32x32xbf16>, vector<32x64xbf16>, vector<32x64xf32> -> vector<32x64xf32>
    %105 = vector.broadcast %4 : vector<1x64xf32> to vector<32x64xf32>
    %106 = arith.addf %104, %105 : vector<32x64xf32>
    %107 = vector.extract_strided_slice %106 {offsets = [0, 0], sizes = [32, 32], strides = [1, 1]} : vector<32x64xf32> to vector<32x32xf32>
    %cst_34 = arith.constant 5.000000e-01 : f32
    %108 = vector.broadcast %cst_34 : f32 to vector<32x32xf32>
    %109 = arith.mulf %108, %107 : vector<32x32xf32>
    %110 = arith.addf %95, %109 : vector<32x32xf32>
    %cst_35 = arith.constant 2.000000e+01 : f32
    %111 = vector.broadcast %cst_35 : f32 to vector<32x32xf32>
    %112 = arith.cmpf ogt, %110, %111 : vector<32x32xf32>
    %cst_36 = arith.constant 2.000000e+01 : f32
    %113 = vector.broadcast %cst_36 : f32 to vector<32x32xf32>
    %114 = arith.minimumf %110, %113 : vector<32x32xf32>
    %115 = math.exp %114 : vector<32x32xf32>
    %116 = math.log1p %115 : vector<32x32xf32>
    %117 = arith.select %112, %110, %116 : vector<32x32xi1>, vector<32x32xf32>
    %118 = arith.truncf %117 : vector<32x32xf32> to vector<32x32xbf16>
    %cst_37 = arith.constant dense<0.000000e+00> : vector<32x64xf32>
    %119 = tpu.matmul %118, %6, %cst_37 {dimension_numbers = #tpu.dot_dimension_numbers<[1], [0], [0], [1], [0, 0, 1, 1], [], []>} : vector<32x32xbf16>, vector<32x64xbf16>, vector<32x64xf32> -> vector<32x64xf32>
    %120 = vector.broadcast %4 : vector<1x64xf32> to vector<32x64xf32>
    %121 = arith.addf %119, %120 : vector<32x64xf32>
    %cst_38 = arith.constant 2.000000e+00 : f32
    %122 = vector.broadcast %cst_38 : f32 to vector<32x64xf32>
    %123 = arith.mulf %122, %121 : vector<32x64xf32>
    %124 = arith.addf %106, %123 : vector<32x64xf32>
    %125 = vector.extract_strided_slice %121 {offsets = [0, 0], sizes = [32, 32], strides = [1, 1]} : vector<32x64xf32> to vector<32x32xf32>
    %cst_39 = arith.constant 5.000000e-01 : f32
    %126 = vector.broadcast %cst_39 : f32 to vector<32x32xf32>
    %127 = arith.mulf %126, %125 : vector<32x32xf32>
    %128 = arith.addf %95, %127 : vector<32x32xf32>
    %cst_40 = arith.constant 2.000000e+01 : f32
    %129 = vector.broadcast %cst_40 : f32 to vector<32x32xf32>
    %130 = arith.cmpf ogt, %128, %129 : vector<32x32xf32>
    %cst_41 = arith.constant 2.000000e+01 : f32
    %131 = vector.broadcast %cst_41 : f32 to vector<32x32xf32>
    %132 = arith.minimumf %128, %131 : vector<32x32xf32>
    %133 = math.exp %132 : vector<32x32xf32>
    %134 = math.log1p %133 : vector<32x32xf32>
    %135 = arith.select %130, %128, %134 : vector<32x32xi1>, vector<32x32xf32>
    %136 = arith.truncf %135 : vector<32x32xf32> to vector<32x32xbf16>
    %cst_42 = arith.constant dense<0.000000e+00> : vector<32x64xf32>
    %137 = tpu.matmul %136, %6, %cst_42 {dimension_numbers = #tpu.dot_dimension_numbers<[1], [0], [0], [1], [0, 0, 1, 1], [], []>} : vector<32x32xbf16>, vector<32x64xbf16>, vector<32x64xf32> -> vector<32x64xf32>
    %138 = vector.broadcast %4 : vector<1x64xf32> to vector<32x64xf32>
    %139 = arith.addf %137, %138 : vector<32x64xf32>
    %cst_43 = arith.constant 2.000000e+00 : f32
    %140 = vector.broadcast %cst_43 : f32 to vector<32x64xf32>
    %141 = arith.mulf %140, %139 : vector<32x64xf32>
    %142 = arith.addf %124, %141 : vector<32x64xf32>
    %143 = vector.extract_strided_slice %139 {offsets = [0, 0], sizes = [32, 32], strides = [1, 1]} : vector<32x64xf32> to vector<32x32xf32>
    %144 = arith.addf %95, %143 : vector<32x32xf32>
    %cst_44 = arith.constant 2.000000e+01 : f32
    %145 = vector.broadcast %cst_44 : f32 to vector<32x32xf32>
    %146 = arith.cmpf ogt, %144, %145 : vector<32x32xf32>
    %cst_45 = arith.constant 2.000000e+01 : f32
    %147 = vector.broadcast %cst_45 : f32 to vector<32x32xf32>
    %148 = arith.minimumf %144, %147 : vector<32x32xf32>
    %149 = math.exp %148 : vector<32x32xf32>
    %150 = math.log1p %149 : vector<32x32xf32>
    %151 = arith.select %146, %144, %150 : vector<32x32xi1>, vector<32x32xf32>
    %152 = arith.truncf %151 : vector<32x32xf32> to vector<32x32xbf16>
    %cst_46 = arith.constant dense<0.000000e+00> : vector<32x64xf32>
    %153 = tpu.matmul %152, %6, %cst_46 {dimension_numbers = #tpu.dot_dimension_numbers<[1], [0], [0], [1], [0, 0, 1, 1], [], []>} : vector<32x32xbf16>, vector<32x64xbf16>, vector<32x64xf32> -> vector<32x64xf32>
    %154 = vector.broadcast %4 : vector<1x64xf32> to vector<32x64xf32>
    %155 = arith.addf %153, %154 : vector<32x64xf32>
    %156 = arith.addf %142, %155 : vector<32x64xf32>
    %cst_47 = arith.constant 0.166666672 : f32
    %157 = vector.broadcast %cst_47 : f32 to vector<32x64xf32>
    %158 = arith.mulf %156, %157 : vector<32x64xf32>
    %159 = arith.addf %93, %158 : vector<32x64xf32>
    %160 = vector.extract_strided_slice %159 {offsets = [0, 32], sizes = [32, 32], strides = [1, 1]} : vector<32x64xf32> to vector<32x32xf32>
    %161 = vector.extract_strided_slice %159 {offsets = [0, 0], sizes = [32, 32], strides = [1, 1]} : vector<32x64xf32> to vector<32x32xf32>
    %cst_48 = arith.constant 2.000000e+01 : f32
    %162 = vector.broadcast %cst_48 : f32 to vector<32x32xf32>
    %163 = arith.cmpf ogt, %161, %162 : vector<32x32xf32>
    %cst_49 = arith.constant 2.000000e+01 : f32
    %164 = vector.broadcast %cst_49 : f32 to vector<32x32xf32>
    %165 = arith.minimumf %161, %164 : vector<32x32xf32>
    %166 = math.exp %165 : vector<32x32xf32>
    %167 = math.log1p %166 : vector<32x32xf32>
    %168 = arith.select %163, %161, %167 : vector<32x32xi1>, vector<32x32xf32>
    %169 = arith.truncf %168 : vector<32x32xf32> to vector<32x32xbf16>
    %cst_50 = arith.constant dense<0.000000e+00> : vector<32x64xf32>
    %170 = tpu.matmul %169, %6, %cst_50 {dimension_numbers = #tpu.dot_dimension_numbers<[1], [0], [0], [1], [0, 0, 1, 1], [], []>} : vector<32x32xbf16>, vector<32x64xbf16>, vector<32x64xf32> -> vector<32x64xf32>
    %171 = vector.broadcast %4 : vector<1x64xf32> to vector<32x64xf32>
    %172 = arith.addf %170, %171 : vector<32x64xf32>
    %173 = vector.extract_strided_slice %172 {offsets = [0, 0], sizes = [32, 32], strides = [1, 1]} : vector<32x64xf32> to vector<32x32xf32>
    %cst_51 = arith.constant 5.000000e-01 : f32
    %174 = vector.broadcast %cst_51 : f32 to vector<32x32xf32>
    %175 = arith.mulf %174, %173 : vector<32x32xf32>
    %176 = arith.addf %161, %175 : vector<32x32xf32>
    %cst_52 = arith.constant 2.000000e+01 : f32
    %177 = vector.broadcast %cst_52 : f32 to vector<32x32xf32>
    %178 = arith.cmpf ogt, %176, %177 : vector<32x32xf32>
    %cst_53 = arith.constant 2.000000e+01 : f32
    %179 = vector.broadcast %cst_53 : f32 to vector<32x32xf32>
    %180 = arith.minimumf %176, %179 : vector<32x32xf32>
    %181 = math.exp %180 : vector<32x32xf32>
    %182 = math.log1p %181 : vector<32x32xf32>
    %183 = arith.select %178, %176, %182 : vector<32x32xi1>, vector<32x32xf32>
    %184 = arith.truncf %183 : vector<32x32xf32> to vector<32x32xbf16>
    %cst_54 = arith.constant dense<0.000000e+00> : vector<32x64xf32>
    %185 = tpu.matmul %184, %6, %cst_54 {dimension_numbers = #tpu.dot_dimension_numbers<[1], [0], [0], [1], [0, 0, 1, 1], [], []>} : vector<32x32xbf16>, vector<32x64xbf16>, vector<32x64xf32> -> vector<32x64xf32>
    %186 = vector.broadcast %4 : vector<1x64xf32> to vector<32x64xf32>
    %187 = arith.addf %185, %186 : vector<32x64xf32>
    %cst_55 = arith.constant 2.000000e+00 : f32
    %188 = vector.broadcast %cst_55 : f32 to vector<32x64xf32>
    %189 = arith.mulf %188, %187 : vector<32x64xf32>
    %190 = arith.addf %172, %189 : vector<32x64xf32>
    %191 = vector.extract_strided_slice %187 {offsets = [0, 0], sizes = [32, 32], strides = [1, 1]} : vector<32x64xf32> to vector<32x32xf32>
    %cst_56 = arith.constant 5.000000e-01 : f32
    %192 = vector.broadcast %cst_56 : f32 to vector<32x32xf32>
    %193 = arith.mulf %192, %191 : vector<32x32xf32>
    %194 = arith.addf %161, %193 : vector<32x32xf32>
    %cst_57 = arith.constant 2.000000e+01 : f32
    %195 = vector.broadcast %cst_57 : f32 to vector<32x32xf32>
    %196 = arith.cmpf ogt, %194, %195 : vector<32x32xf32>
    %cst_58 = arith.constant 2.000000e+01 : f32
    %197 = vector.broadcast %cst_58 : f32 to vector<32x32xf32>
    %198 = arith.minimumf %194, %197 : vector<32x32xf32>
    %199 = math.exp %198 : vector<32x32xf32>
    %200 = math.log1p %199 : vector<32x32xf32>
    %201 = arith.select %196, %194, %200 : vector<32x32xi1>, vector<32x32xf32>
    %202 = arith.truncf %201 : vector<32x32xf32> to vector<32x32xbf16>
    %cst_59 = arith.constant dense<0.000000e+00> : vector<32x64xf32>
    %203 = tpu.matmul %202, %6, %cst_59 {dimension_numbers = #tpu.dot_dimension_numbers<[1], [0], [0], [1], [0, 0, 1, 1], [], []>} : vector<32x32xbf16>, vector<32x64xbf16>, vector<32x64xf32> -> vector<32x64xf32>
    %204 = vector.broadcast %4 : vector<1x64xf32> to vector<32x64xf32>
    %205 = arith.addf %203, %204 : vector<32x64xf32>
    %cst_60 = arith.constant 2.000000e+00 : f32
    %206 = vector.broadcast %cst_60 : f32 to vector<32x64xf32>
    %207 = arith.mulf %206, %205 : vector<32x64xf32>
    %208 = arith.addf %190, %207 : vector<32x64xf32>
    %209 = vector.extract_strided_slice %205 {offsets = [0, 0], sizes = [32, 32], strides = [1, 1]} : vector<32x64xf32> to vector<32x32xf32>
    %210 = arith.addf %161, %209 : vector<32x32xf32>
    %cst_61 = arith.constant 2.000000e+01 : f32
    %211 = vector.broadcast %cst_61 : f32 to vector<32x32xf32>
    %212 = arith.cmpf ogt, %210, %211 : vector<32x32xf32>
    %cst_62 = arith.constant 2.000000e+01 : f32
    %213 = vector.broadcast %cst_62 : f32 to vector<32x32xf32>
    %214 = arith.minimumf %210, %213 : vector<32x32xf32>
    %215 = math.exp %214 : vector<32x32xf32>
    %216 = math.log1p %215 : vector<32x32xf32>
    %217 = arith.select %212, %210, %216 : vector<32x32xi1>, vector<32x32xf32>
    %218 = arith.truncf %217 : vector<32x32xf32> to vector<32x32xbf16>
    %cst_63 = arith.constant dense<0.000000e+00> : vector<32x64xf32>
    %219 = tpu.matmul %218, %6, %cst_63 {dimension_numbers = #tpu.dot_dimension_numbers<[1], [0], [0], [1], [0, 0, 1, 1], [], []>} : vector<32x32xbf16>, vector<32x64xbf16>, vector<32x64xf32> -> vector<32x64xf32>
    %220 = vector.broadcast %4 : vector<1x64xf32> to vector<32x64xf32>
    %221 = arith.addf %219, %220 : vector<32x64xf32>
    %222 = arith.addf %208, %221 : vector<32x64xf32>
    %cst_64 = arith.constant 0.166666672 : f32
    %223 = vector.broadcast %cst_64 : f32 to vector<32x64xf32>
    %224 = arith.mulf %222, %223 : vector<32x64xf32>
    %225 = arith.addf %159, %224 : vector<32x64xf32>
    %226 = vector.extract_strided_slice %225 {offsets = [0, 32], sizes = [32, 32], strides = [1, 1]} : vector<32x64xf32> to vector<32x32xf32>
    %227 = tpu.concatenate %94, %160, %226 in 1 : vector<32x32xf32>, vector<32x32xf32>, vector<32x32xf32> -> vector<32x96xf32>
    %c0_65 = arith.constant 0 : index
    %c0_66 = arith.constant 0 : index
    %228 = vector.load %arg5[%c0_65, %c0_66] : memref<32x96xf32, #tpu.memory_space<vmem>>, vector<32x96xf32>
    tpu.vector_store %arg5[%c0_65, %c0_66], %227 {strides = array<i32>} : memref<32x96xf32, #tpu.memory_space<vmem>>, vector<32x96xf32>,
    return
  }
  func.func @transform_0(%arg0: i32) -> (i32, i32) {
    %c0_i32 = arith.constant 0 : i32
    %c0_i32_0 = arith.constant 0 : i32
    return %arg0, %c0_i32 : i32, i32
  }
  func.func @transform_1(%arg0: i32) -> (i32, i32) {
    %c0_i32 = arith.constant 0 : i32
    %c0_i32_0 = arith.constant 0 : i32
    %c0_i32_1 = arith.constant 0 : i32
    return %c0_i32, %c0_i32_0 : i32, i32
  }
  func.func @transform_2(%arg0: i32) -> (i32, i32) {
    %c0_i32 = arith.constant 0 : i32
    %c0_i32_0 = arith.constant 0 : i32
    %c0_i32_1 = arith.constant 0 : i32
    return %c0_i32, %c0_i32_0 : i32, i32
  }
  func.func @transform_3(%arg0: i32) -> (i32, i32) {
    %c0_i32 = arith.constant 0 : i32
    %c0_i32_0 = arith.constant 0 : i32
    %c0_i32_1 = arith.constant 0 : i32
    return %c0_i32, %c0_i32_0 : i32, i32
  }
  func.func @transform_4(%arg0: i32) -> (i32, i32) {
    %c0_i32 = arith.constant 0 : i32
    %c0_i32_0 = arith.constant 0 : i32
    return %arg0, %c0_i32 : i32, i32
  }
}

</mosaic_0001>

<bundles_post_ra>
// kernel: ppode_forward.1
= control target key start
LH: loop header
LB: loop body
LE: loop exit
PB: predicated region body
PF: predicated region fallthrough
CT: control target
= control target key end

     0   :  { %v2210_v0 = vmov 1   ;;  %v2211_v1 = vmov 0   ;;  %vm173_vm4 = vcmask 261120   ;;  %s2212_s13 = smov 96   ;;  %s2855_s0 = inlined_call_operand.vmem [shape: f32[32,2], index: 0, kind: input, shape index: {}]   ;;  %s2856_s1 = inlined_call_operand.vmem [shape: bf16[32,64], index: 1, kind: input, shape index: {}]   ;;  %s2857_s3 = inlined_call_operand.vmem [shape: f32[40,64], index: 3, kind: input, shape index: {}]   ;;  %s2858_s2 = inlined_call_operand.vmem [shape: bf16[32,64], index: 2, kind: input, shape index: {}]   ;;  %s2859_s4 = inlined_call_operand.vmem [shape: f32[32,96], index: 4, kind: output, shape index: {}]  }
   0x1   :  { %1991 = vset.pattern.permute.xlu1 %v2210_v0  ;;  %1990 = vset.pattern.permute.xlu0 %v2211_v1  ;;  %v31_v2 = vld [vmem:[%s2855_s0] sm:$0xff]  ;;  %v32_v3 = vld [vmem:[%s2855_s0 + $0x8] sm:$0xff]  ;;  %v33_v4 = vld [vmem:[%s2855_s0 + $0x10] sm:$0xff] }
   0x2   :  { %64 = vperm.xlu1 %1991, %v31_v2   ;;  %37 = vperm.xlu0 %1990, %v31_v2   ;;  %v34_v5 = vld [vmem:[%s2855_s0 + $0x18] sm:$0xff]  ;;  %v1995_v6 = vld [vmem:[%s2856_s1 + $0x8] sm:$0xff]   ;;  %v1996_v7 = vld [vmem:[%s2856_s1] sm:$0xff]  }
   0x3   :  { %1882 = vmatprep.subr.bf16.mxu0 %v1995_v6  ;;  %v1796_v8 = vld [vmem:[%s2857_s3 + $0x8] ss:$0 sm:$0xff]  ;;  %v1795_v9 = vld [vmem:[%s2857_s3] ss:$0 sm:$0xff]  ;;  %v1797_v14 = vld [vmem:[%s2857_s3 + $0x10] ss:$0 sm:$0xff] }
   0x4   :  { %1883 = vmatpush3.bf16.msra.mxu0 %v1995_v6 }
   0x5   :  { %1884 = vmatprep.subr.bf16.mxu0 %v1996_v7 }
   0x6   :  { %68 = vperm.xlu1 %1991, %v32_v3   ;;  %42 = vperm.xlu0 %1990, %v32_v3  }
   0x8   :  { %1885 = vmatpush3.bf16.msra.mxu0 %v1996_v7 }
   0xa   :  { %1992 = vset.pattern.permute.xlu1 %v2211_v1  ;;  %47 = vperm.xlu0 %1990, %v33_v4  }
   0xb   :  { %52 = vperm.xlu1 %1992, %v34_v5  }
   0xe   :  { %1993 = vset.pattern.permute.xlu0 %v2210_v0 }
   0xf   :  { %1994 = vset.pattern.permute.xlu1 %v2210_v0  ;;  %72 = vperm.xlu0 %1993, %v33_v4  }
  0x10   :  { %76 = vperm.xlu1 %1994, %v34_v5  }
  0x7d   :  { %v65_v10 = vpop.permute.xlu1 %64  ;;  %v38_v11 = vpop.permute.xlu0 %37 }
  0x7e   :  { %v83_v12 = vmul.f32 %v1796_v8, %v65_v10  ;;  %v59_v13 = vmul.f32 %v1795_v9, %v38_v11 }
  0x80   :  { %v87_v15 = vadd.f32 %v83_v12, %v59_v13 }
  0x81   :  { %v69_v16 = vpop.permute.xlu1 %68  ;;  %v43_v17 = vpop.permute.xlu0 %42 }
  0x82   :  { %v95_v18 = vadd.f32 %v1797_v14, %v87_v15  ;;  %v84_v19 = vmul.f32 %v1796_v8, %v69_v16  ;;  %v60_v20 = vmul.f32 %v1795_v9, %v43_v17 }
  0x84   :  { %v103_v21 = vmin.f32 %v95_v18, 20.0  ;;  %v88_v22 = vadd.f32 %v84_v19, %v60_v20  ;;  %vm99_vm2 = vcmp.gt.f32.partialorder %v95_v18, 20.0 }
  0x85   :  { %v48_v23 = vpop.permute.xlu0 %47 }
  0x86   :  { %v107_v24 = vmul.f32 1.442695, %v103_v21  ;;  %v96_v25 = vadd.f32 %v1797_v14, %v88_v22  ;;  %v53_v26 = vpop.permute.xlu1 %52  ;;  %v61_v30 = vmul.f32 %v1795_v9, %v48_v23  ;;  %v2271_v21 = vld [vmem:[%s2858_s2 + $0x8] sm:$0xff]   ;;  %v2276_v22 = vld [vmem:[%s2858_s2] sm:$0xff]   ;;  %v1798_v23 = vld [vmem:[%s2857_s3 + $0x18] ss:$0 sm:$0xff] }
  0x87   :  { %v62_v33 = vmul.f32 %v1795_v9, %v53_v26  ;;  %1890 = vmatprep.subr.bf16.mxu1 %v2271_v21  ;;  %1898 = vmatprep.subr.bf16.mxu0 %v2271_v21 }
  0x88   :  { %1999 = vpow2.f32 %v107_v24  ;;  %v104_v27 = vmin.f32 %v96_v25, 20.0  ;;  %vm100_vm3 = vcmp.gt.f32.partialorder %v96_v25, 20.0  ;;  %1891 = vmatpush3.bf16.msra.mxu1 %v2271_v21 }
  0x89   :  { %1892 = vmatprep.subr.bf16.mxu1 %v2276_v22 }
  0x8a   :  { %v109_v28 = vmul.f32 1.442695, %v104_v27  ;;  %v73_v29 = vpop.permute.xlu0 %72 }
  0x8b   :  { %v85_v31 = vmul.f32 %v1796_v8, %v73_v29  ;;  %v77_v32 = vpop.permute.xlu1 %76 }
  0x8c   :  { %2001 = vpow2.f32 %v109_v28  ;;  %v86_v34 = vmul.f32 %v1796_v8, %v77_v32  ;;  %1893 = vmatpush3.bf16.msra.mxu1 %v2276_v22 }
  0x8d   :  { %v89_v35 = vadd.f32 %v85_v31, %v61_v30  ;;  %1906 = vmatprep.subr.bf16.mxu1 %v2271_v21 }
  0x8e   :  { %v90_v36 = vadd.f32 %v86_v34, %v62_v33 }
  0x8f   :  { %v97_v37 = vadd.f32 %v1797_v14, %v89_v35 }
  0x90   :  { %v98_v38 = vadd.f32 %v1797_v14, %v90_v36 }
  0x91   :  { %v105_v39 = vmin.f32 %v97_v37, 20.0  ;;  %vm101_vm6 = vcmp.gt.f32.partialorder %v97_v37, 20.0 }
  0x92   :  { %v106_v40 = vmin.f32 %v98_v38, 20.0  ;;  %vm102_vm8 = vcmp.gt.f32.partialorder %v98_v38, 20.0 }
  0x93   :  { %v111_v41 = vmul.f32 1.442695, %v105_v39 }
  0x94   :  { %v113_v42 = vmul.f32 1.442695, %v106_v40 }
  0x95   :  { %v2000_v43 = vpop.eup %1999  ;;  %2003 = vpow2.f32 %v111_v41 }
  0x96   :  { %2005 = vpow2.f32 %v113_v42  ;;  %v115_v44 = vadd.f32 1.0, %v2000_v43  ;;  %v118_v47 = vmul.f32 -0.5, %v2000_v43  ;;  %v121_v55 = vand.u32 2147483647, %v2000_v43 }
  0x98   :  { %2007 = vlog2.f32 %v115_v44  ;;  %v119_v52 = vadd.f32 1.0, %v118_v47  ;;  %vm122_vm0 = vcmp.lt.f32.partialorder %v121_v55, 0.0004427343 }
  0x99   :  { %v2002_v45 = vpop.eup %2001 }
  0x9a   :  { %v124_v46 = vadd.f32 1.0, %v2002_v45  ;;  %v127_v49 = vmul.f32 -0.5, %v2002_v45  ;;  %v130_v58 = vand.u32 2147483647, %v2002_v45  ;;  %v120_v59 = vmul.f32 %v2000_v43, %v119_v52 }
  0x9c   :  { %2009 = vlog2.f32 %v124_v46  ;;  %v128_v57 = vadd.f32 1.0, %v127_v49  ;;  %vm131_vm1 = vcmp.lt.f32.partialorder %v130_v58, 0.0004427343 }
  0x9e   :  { %v129_v63 = vmul.f32 %v2002_v45, %v128_v57 }
  0xa2   :  { %v2004_v48 = vpop.eup %2003 }
  0xa3   :  { %v2006_v50 = vpop.eup %2005  ;;  %v133_v51 = vadd.f32 1.0, %v2004_v48  ;;  %v136_v0 = vmul.f32 -0.5, %v2004_v48  ;;  %v139_v7 = vand.u32 2147483647, %v2004_v48 }
  0xa4   :  { %v142_v53 = vadd.f32 1.0, %v2006_v50  ;;  %v145_v2 = vmul.f32 -0.5, %v2006_v50  ;;  %v148_v9 = vand.u32 2147483647, %v2006_v50 }
  0xa5   :  { %v2008_v54 = vpop.eup %2007  ;;  %2011 = vlog2.f32 %v133_v51  ;;  %v137_v6 = vadd.f32 1.0, %v136_v0  ;;  %vm140_vm5 = vcmp.lt.f32.partialorder %v139_v7, 0.0004427343 }
  0xa6   :  { %v117_v56 = vmul.f32 0.6931472, %v2008_v54  ;;  %2013 = vlog2.f32 %v142_v53  ;;  %v146_v8 = vadd.f32 1.0, %v145_v2  ;;  %vm149_vm7 = vcmp.lt.f32.partialorder %v148_v9, 0.0004427343 }
  0xa7   :  { %v138_v13 = vmul.f32 %v2004_v48, %v137_v6 }
  0xa8   :  { %v123_v61 = vsel %vm122_vm0, %v120_v59, %v117_v56  ;;  %v147_v15 = vmul.f32 %v2006_v50, %v146_v8 }
  0xa9   :  { %v2010_v60 = vpop.eup %2009  ;;  %v151_v3 = vsel %vm99_vm2, %v95_v18, %v123_v61 }
  0xaa   :  { %v126_v62 = vmul.f32 0.6931472, %v2010_v60 }
  0xac   :  { %v132_v1 = vsel %vm131_vm1, %v129_v63, %v126_v62 }
  0xad   :  { %v152_v4 = vsel %vm100_vm3, %v96_v25, %v132_v1 }
  0xae   :  { %v155_v5 = vpack.c.bf16 %v152_v4, %v151_v3 }
  0xb0   :  { %1886 = vmatprep.mubr.msk.bf16.mxu0 %vm173_vm4, %v155_v5 }
  0xb2   :  { %v2012_v10 = vpop.eup %2011 }
  0xb3   :  { %v2014_v11 = vpop.eup %2013  ;;  %v135_v12 = vmul.f32 0.6931472, %v2012_v10 }
  0xb4   :  { %v144_v14 = vmul.f32 0.6931472, %v2014_v11 }
  0xb5   :  { %v141_v16 = vsel %vm140_vm5, %v138_v13, %v135_v12 }
  0xb6   :  { %v150_v17 = vsel %vm149_vm7, %v147_v15, %v144_v14  ;;  %v153_v18 = vsel %vm101_vm6, %v97_v37, %v141_v16 }
  0xb7   :  { %v154_v19 = vsel %vm102_vm8, %v98_v38, %v150_v17 }
  0xb8   :  { %v156_v20 = vpack.c.bf16 %v154_v19, %v153_v18 }
  0xba   :  { %1887 = vmatmul.mubr.msk.bf16.vlgmr.msra.gmra.mxu0 %vm173_vm4, %v156_v20  ;;  %v2332_v20 = vld [vmem:[%s2857_s3 + $0x20] ss:$0 sm:$0xff] }
  0xbb   :  { %1899 = vmatpush3.bf16.msra.mxu0 %v2271_v21 }
  0xbc   :  { %1900 = vmatprep.subr.bf16.mxu0 %v2276_v22 }
  0xbf   :  { %1901 = vmatpush3.bf16.msra.mxu0 %v2276_v22 }
  0xc0   :  { %1914 = vmatprep.subr.bf16.mxu0 %v2271_v21 }
 0x17a   :  { %v1888_v24 = vpop.f32.mrf.mxu0 }
 0x17b   :  { %v2291_v25 = vadd.f32 %v1888_v24, %v1798_v23 }
 0x17c   :  { %v214_v26 = vpop.f32.mrf.mxu0 }
 0x17d   :  { %v235_v27 = vmin.f32 %v2291_v25, 20.0  ;;  %v2294_v28 = vadd.f32 %v1798_v23, %v214_v26  ;;  %vm231_vm0 = vcmp.gt.f32.partialorder %v2291_v25, 20.0 }
 0x17e   :  { %v1889_v29 = vpop.f32.mrf.mxu0 }
 0x17f   :  { %v241_v30 = vmul.f32 1.442695, %v235_v27  ;;  %v233_v31 = vmin.f32 %v2294_v28, 20.0  ;;  %v2297_v32 = vadd.f32 %v1889_v29, %v1798_v23  ;;  %vm229_vm14 = vcmp.gt.f32.partialorder %v2294_v28, 20.0 }
 0x180   :  { %v217_v33 = vpop.f32.mrf.mxu0 }
 0x181   :  { %2015 = vpow2.f32 %v241_v30  ;;  %v237_v34 = vmul.f32 1.442695, %v233_v31  ;;  %v236_v35 = vmin.f32 %v2297_v32, 20.0  ;;  %v2300_v36 = vadd.f32 %v1798_v23, %v217_v33 }
 0x182   :  { %vm232_vm13 = vcmp.gt.f32.partialorder %v2297_v32, 20.0 }
 0x183   :  { %2017 = vpow2.f32 %v237_v34  ;;  %v243_v37 = vmul.f32 1.442695, %v236_v35  ;;  %v234_v38 = vmin.f32 %v2300_v36, 20.0  ;;  %vm230_vm15 = vcmp.gt.f32.partialorder %v2300_v36, 20.0 }
 0x185   :  { %2019 = vpow2.f32 %v243_v37  ;;  %v239_v39 = vmul.f32 1.442695, %v234_v38 }
 0x187   :  { %2021 = vpow2.f32 %v239_v39 }
 0x18e   :  { %v2016_v40 = vpop.eup %2015 }
 0x18f   :  { %v263_v41 = vadd.f32 1.0, %v2016_v40  ;;  %v266_v49 = vmul.f32 -0.5, %v2016_v40  ;;  %v269_v54 = vand.u32 2147483647, %v2016_v40 }
 0x190   :  { %v2018_v42 = vpop.eup %2017 }
 0x191   :  { %v245_v43 = vadd.f32 1.0, %v2018_v42  ;;  %2023 = vlog2.f32 %v263_v41  ;;  %v248_v48 = vmul.f32 -0.5, %v2018_v42  ;;  %v251_v56 = vand.u32 2147483647, %v2018_v42 }
 0x192   :  { %v2020_v44 = vpop.eup %2019  ;;  %v267_v57 = vadd.f32 1.0, %v266_v49  ;;  %vm2303_vm9 = vcmp.lt.f32.partialorder %v269_v54, 0.0004427343 }
 0x193   :  { %2025 = vlog2.f32 %v245_v43  ;;  %v272_v45 = vadd.f32 1.0, %v2020_v44  ;;  %v275_v50 = vmul.f32 -0.5, %v2020_v44  ;;  %v249_v53 = vadd.f32 1.0, %v248_v48 }
 0x194   :  { %v2022_v46 = vpop.eup %2021  ;;  %v278_v61 = vand.u32 2147483647, %v2020_v44  ;;  %vm2307_vm10 = vcmp.lt.f32.partialorder %v251_v56, 0.0004427343  ;;  %v268_v5 = vmul.f32 %v2016_v40, %v267_v57 }
 0x195   :  { %v254_v47 = vadd.f32 1.0, %v2022_v46  ;;  %2027 = vlog2.f32 %v272_v45  ;;  %v257_v51 = vmul.f32 -0.5, %v2022_v46  ;;  %v276_v58 = vadd.f32 1.0, %v275_v50 }
 0x196   :  { %v260_v62 = vand.u32 2147483647, %v2022_v46  ;;  %v250_v1 = vmul.f32 %v2018_v42, %v249_v53  ;;  %vm279_vm11 = vcmp.lt.f32.partialorder %v278_v61, 0.0004427343 }
 0x197   :  { %2029 = vlog2.f32 %v254_v47  ;;  %v258_v60 = vadd.f32 1.0, %v257_v51  ;;  %v277_v7 = vmul.f32 %v2020_v44, %v276_v58 }
 0x198   :  { %vm261_vm12 = vcmp.lt.f32.partialorder %v260_v62, 0.0004427343 }
 0x199   :  { %v259_v10 = vmul.f32 %v2022_v46, %v258_v60 }
 0x19e   :  { %v2024_v52 = vpop.eup %2023 }
 0x19f   :  { %v265_v63 = vmul.f32 0.6931472, %v2024_v52 }
 0x1a0   :  { %v2026_v55 = vpop.eup %2025 }
 0x1a1   :  { %v247_v59 = vmul.f32 0.6931472, %v2026_v55  ;;  %v271_v11 = vsel %vm2303_vm9, %v268_v5, %v265_v63 }
 0x1a2   :  { %v2028_v0 = vpop.eup %2027  ;;  %v283_v18 = vsel %vm231_vm0, %v2291_v25, %v271_v11 }
 0x1a3   :  { %v274_v6 = vmul.f32 0.6931472, %v2028_v0  ;;  %v253_v8 = vsel %vm2307_vm10, %v250_v1, %v247_v59 }
 0x1a4   :  { %v2030_v3 = vpop.eup %2029  ;;  %v281_v15 = vsel %vm229_vm14, %v2294_v28, %v253_v8 }
 0x1a5   :  { %v256_v9 = vmul.f32 0.6931472, %v2030_v3  ;;  %v280_v12 = vsel %vm279_vm11, %v277_v7, %v274_v6 }
 0x1a6   :  { %v284_v14 = vsel %vm232_vm13, %v2297_v32, %v280_v12 }
 0x1a7   :  { %v262_v13 = vsel %vm261_vm12, %v259_v10, %v256_v9  ;;  %v286_v19 = vpack.c.bf16 %v284_v14, %v283_v18 }
 0x1a8   :  { %v282_v16 = vsel %vm230_vm15, %v2300_v36, %v262_v13 }
 0x1a9   :  { %v285_v17 = vpack.c.bf16 %v282_v16, %v281_v15 }
 0x1ab   :  { %1894 = vmatprep.mubr.msk.bf16.mxu1 %vm173_vm4, %v285_v17 }
 0x1ac   :  { %1895 = vmatmul.mubr.msk.bf16.vlgmr.msra.gmra.mxu1 %vm173_vm4, %v286_v19 }
 0x1ad   :  { %1907 = vmatpush3.bf16.msra.mxu1 %v2271_v21 }
 0x1ae   :  { %1908 = vmatprep.subr.bf16.mxu1 %v2276_v22 }
 0x1b1   :  { %1909 = vmatpush3.bf16.msra.mxu1 %v2276_v22 }
 0x1b2   :  { %1922 = vmatprep.subr.bf16.mxu1 %v2271_v21 }
 0x26c   :  { %v1896_v23 = vpop.f32.mrf.mxu1 }
 0x26d   :  { %v2335_v24 = vadd.f32 %v1896_v23, %v2332_v20 }
 0x26e   :  { %v343_v26 = vpop.f32.mrf.mxu1 }
 0x26f   :  { %v360_v27 = vmul.f32 0.5, %v2335_v24  ;;  %v2339_v29 = vadd.f32 %v2332_v20, %v343_v26 }
 0x270   :  { %v1897_v30 = vpop.f32.mrf.mxu1 }
 0x271   :  { %v2342_v31 = vadd.f32 %v360_v27, %v2291_v25  ;;  %v358_v33 = vmul.f32 0.5, %v2339_v29  ;;  %v2346_v34 = vadd.f32 %v1897_v30, %v2332_v20 }
 0x272   :  { %v346_v35 = vpop.f32.mrf.mxu1 }
 0x273   :  { %v372_v37 = vmin.f32 %v2342_v31, 20.0  ;;  %v2350_v38 = vadd.f32 %v358_v33, %v2294_v28  ;;  %v361_v39 = vmul.f32 0.5, %v2346_v34  ;;  %v2354_v40 = vadd.f32 %v2332_v20, %v346_v35 }
 0x274   :  { %vm368_vm9 = vcmp.gt.f32.partialorder %v2342_v31, 20.0 }
 0x275   :  { %v378_v41 = vmul.f32 1.442695, %v372_v37  ;;  %v370_v42 = vmin.f32 %v2350_v38, 20.0  ;;  %v365_v43 = vadd.f32 %v361_v39, %v2297_v32  ;;  %v359_v44 = vmul.f32 0.5, %v2354_v40 }
 0x276   :  { %vm366_vm7 = vcmp.gt.f32.partialorder %v2350_v38, 20.0 }
 0x277   :  { %2031 = vpow2.f32 %v378_v41  ;;  %v374_v45 = vmul.f32 1.442695, %v370_v42  ;;  %v373_v46 = vmin.f32 %v365_v43, 20.0  ;;  %v363_v47 = vadd.f32 %v359_v44, %v2300_v36 }
 0x278   :  { %vm369_vm5 = vcmp.gt.f32.partialorder %v365_v43, 20.0 }
 0x279   :  { %2033 = vpow2.f32 %v374_v45  ;;  %v380_v48 = vmul.f32 1.442695, %v373_v46  ;;  %v371_v49 = vmin.f32 %v363_v47, 20.0  ;;  %vm367_vm8 = vcmp.gt.f32.partialorder %v363_v47, 20.0 }
 0x27b   :  { %2035 = vpow2.f32 %v380_v48  ;;  %v376_v50 = vmul.f32 1.442695, %v371_v49 }
 0x27d   :  { %2037 = vpow2.f32 %v376_v50 }
 0x284   :  { %v2032_v51 = vpop.eup %2031 }
 0x285   :  { %v400_v52 = vadd.f32 1.0, %v2032_v51  ;;  %v403_v61 = vmul.f32 -0.5, %v2032_v51  ;;  %v406_v7 = vand.u32 2147483647, %v2032_v51 }
 0x286   :  { %v2034_v53 = vpop.eup %2033 }
 0x287   :  { %v382_v54 = vadd.f32 1.0, %v2034_v53  ;;  %2039 = vlog2.f32 %v400_v52  ;;  %v385_v60 = vmul.f32 -0.5, %v2034_v53  ;;  %v404_v4 = vadd.f32 1.0, %v403_v61 }
 0x288   :  { %v2036_v55 = vpop.eup %2035  ;;  %v388_v5 = vand.u32 2147483647, %v2034_v53  ;;  %vm407_vm3 = vcmp.lt.f32.partialorder %v406_v7, 0.0004427343 }
 0x289   :  { %v409_v56 = vadd.f32 1.0, %v2036_v55  ;;  %2041 = vlog2.f32 %v382_v54  ;;  %v412_v59 = vmul.f32 -0.5, %v2036_v55  ;;  %v415_v1 = vand.u32 2147483647, %v2036_v55 }
 0x28a   :  { %v2038_v57 = vpop.eup %2037  ;;  %v386_v2 = vadd.f32 1.0, %v385_v60  ;;  %v405_v16 = vmul.f32 %v2032_v51, %v404_v4  ;;  %vm389_vm2 = vcmp.lt.f32.partialorder %v388_v5, 0.0004427343 }
 0x28b   :  { %2043 = vlog2.f32 %v409_v56  ;;  %v391_v58 = vadd.f32 1.0, %v2038_v57  ;;  %v394_v62 = vmul.f32 -0.5, %v2038_v57  ;;  %v413_v63 = vadd.f32 1.0, %v412_v59 }
 0x28c   :  { %v397_v13 = vand.u32 2147483647, %v2038_v57  ;;  %vm416_vm1 = vcmp.lt.f32.partialorder %v415_v1, 0.0004427343  ;;  %v387_v14 = vmul.f32 %v2034_v53, %v386_v2 }
 0x28d   :  { %2045 = vlog2.f32 %v391_v58  ;;  %v395_v9 = vadd.f32 1.0, %v394_v62  ;;  %v414_v12 = vmul.f32 %v2036_v55, %v413_v63 }
 0x28e   :  { %vm398_vm6 = vcmp.lt.f32.partialorder %v397_v13, 0.0004427343 }
 0x28f   :  { %v396_v23 = vmul.f32 %v2038_v57, %v395_v9 }
 0x294   :  { %v2040_v0 = vpop.eup %2039 }
 0x295   :  { %v402_v10 = vmul.f32 0.6931472, %v2040_v0 }
 0x296   :  { %v2042_v3 = vpop.eup %2041 }
 0x297   :  { %v384_v8 = vmul.f32 0.6931472, %v2042_v3  ;;  %v408_v26 = vsel %vm407_vm3, %v405_v16, %v402_v10 }
 0x298   :  { %v2044_v6 = vpop.eup %2043  ;;  %v420_v37 = vsel %vm368_vm9, %v2342_v31, %v408_v26 }
 0x299   :  { %v411_v11 = vmul.f32 0.6931472, %v2044_v6  ;;  %v390_v18 = vsel %vm389_vm2, %v387_v14, %v384_v8 }
 0x29a   :  { %v2046_v15 = vpop.eup %2045  ;;  %v418_v33 = vsel %vm366_vm7, %v2350_v38, %v390_v18 }
 0x29b   :  { %v417_v17 = vsel %vm416_vm1, %v414_v12, %v411_v11  ;;  %v393_v19 = vmul.f32 0.6931472, %v2046_v15 }
 0x29c   :  { %v421_v27 = vsel %vm369_vm5, %v365_v43, %v417_v17 }
 0x29d   :  { %v399_v30 = vsel %vm398_vm6, %v396_v23, %v393_v19  ;;  %v423_v41 = vpack.c.bf16 %v421_v27, %v420_v37 }
 0x29e   :  { %v419_v35 = vsel %vm367_vm8, %v363_v47, %v399_v30 }
 0x29f   :  { %v422_v39 = vpack.c.bf16 %v419_v35, %v418_v33 }
 0x2a1   :  { %1902 = vmatprep.mubr.msk.bf16.mxu0 %vm173_vm4, %v422_v39 }
 0x2a2   :  { %1903 = vmatmul.mubr.msk.bf16.vlgmr.msra.gmra.mxu0 %vm173_vm4, %v423_v41 }
 0x2a3   :  { %1915 = vmatpush3.bf16.msra.mxu0 %v2271_v21 }
 0x2a4   :  { %1916 = vmatprep.subr.bf16.mxu0 %v2276_v22 }
 0x2a7   :  { %1917 = vmatpush3.bf16.msra.mxu0 %v2276_v22 }
 0x2a8   :  { %1930 = vmatprep.subr.bf16.mxu0 %v2271_v21 }
 0x362   :  { %v1904_v42 = vpop.f32.mrf.mxu0 }
 0x363   :  { %v2371_v38 = vadd.f32 %v1904_v42, %v2332_v20 }
 0x364   :  { %v464_v43 = vpop.f32.mrf.mxu0 }
 0x365   :  { %v489_v31 = vmul.f32 0.5, %v2371_v38  ;;  %v2375_v44 = vadd.f32 %v2332_v20, %v464_v43 }
 0x366   :  { %v1905_v45 = vpop.f32.mrf.mxu0 }
 0x367   :  { %v2378_v46 = vadd.f32 %v489_v31, %v2291_v25  ;;  %v487_v47 = vmul.f32 0.5, %v2375_v44  ;;  %v2382_v48 = vadd.f32 %v1905_v45, %v2332_v20 }
 0x368   :  { %v467_v49 = vpop.f32.mrf.mxu0 }
 0x369   :  { %v501_v50 = vmin.f32 %v2378_v46, 20.0  ;;  %v2386_v51 = vadd.f32 %v487_v47, %v2294_v28  ;;  %v490_v52 = vmul.f32 0.5, %v2382_v48  ;;  %v2390_v53 = vadd.f32 %v2332_v20, %v467_v49 }
 0x36a   :  { %vm497_vm1 = vcmp.gt.f32.partialorder %v2378_v46, 20.0 }
 0x36b   :  { %v507_v54 = vmul.f32 1.442695, %v501_v50  ;;  %v499_v55 = vmin.f32 %v2386_v51, 20.0  ;;  %v494_v56 = vadd.f32 %v490_v52, %v2297_v32  ;;  %v488_v57 = vmul.f32 0.5, %v2390_v53 }
 0x36c   :  { %vm495_vm15 = vcmp.gt.f32.partialorder %v2386_v51, 20.0 }
 0x36d   :  { %2047 = vpow2.f32 %v507_v54  ;;  %v503_v58 = vmul.f32 1.442695, %v499_v55  ;;  %v502_v59 = vmin.f32 %v494_v56, 20.0  ;;  %v492_v60 = vadd.f32 %v488_v57, %v2300_v36 }
 0x36e   :  { %vm498_vm13 = vcmp.gt.f32.partialorder %v494_v56, 20.0 }
 0x36f   :  { %2049 = vpow2.f32 %v503_v58  ;;  %v509_v61 = vmul.f32 1.442695, %v502_v59  ;;  %v500_v62 = vmin.f32 %v492_v60, 20.0  ;;  %vm496_vm0 = vcmp.gt.f32.partialorder %v492_v60, 20.0 }
 0x371   :  { %2051 = vpow2.f32 %v509_v61  ;;  %v505_v63 = vmul.f32 1.442695, %v500_v62  ;;  %v482_v62 = vmul.f32 2.0, %v2382_v48 }
 0x373   :  { %2053 = vpow2.f32 %v505_v63 }
 0x37a   :  { %v2048_v0 = vpop.eup %2047 }
 0x37b   :  { %v529_v2 = vadd.f32 1.0, %v2048_v0  ;;  %v532_v10 = vmul.f32 -0.5, %v2048_v0  ;;  %v535_v23 = vand.u32 2147483647, %v2048_v0 }
 0x37c   :  { %v2050_v1 = vpop.eup %2049 }
 0x37d   :  { %v511_v3 = vadd.f32 1.0, %v2050_v1  ;;  %v514_v9 = vmul.f32 -0.5, %v2050_v1  ;;  %v533_v17 = vadd.f32 1.0, %v532_v10  ;;  %v517_v18 = vand.u32 2147483647, %v2050_v1 }
 0x37e   :  { %v2052_v4 = vpop.eup %2051  ;;  %vm536_vm12 = vcmp.lt.f32.partialorder %v535_v23, 0.0004427343 }
 0x37f   :  { %2055 = vlog2.f32 %v511_v3  ;;  %v538_v5 = vadd.f32 1.0, %v2052_v4  ;;  %v541_v8 = vmul.f32 -0.5, %v2052_v4  ;;  %v544_v15 = vand.u32 2147483647, %v2052_v4 }
 0x380   :  { %2057 = vlog2.f32 %v529_v2  ;;  %v2054_v6 = vpop.eup %2053  ;;  %v515_v16 = vadd.f32 1.0, %v514_v9  ;;  %v534_v42 = vmul.f32 %v2048_v0, %v533_v17  ;;  %vm518_vm11 = vcmp.lt.f32.partialorder %v517_v18, 0.0004427343 }
 0x381   :  { %2059 = vlog2.f32 %v538_v5  ;;  %v520_v7 = vadd.f32 1.0, %v2054_v6  ;;  %v523_v11 = vmul.f32 -0.5, %v2054_v6  ;;  %v542_v13 = vadd.f32 1.0, %v541_v8 }
 0x382   :  { %v526_v37 = vand.u32 2147483647, %v2054_v6  ;;  %vm545_vm10 = vcmp.lt.f32.partialorder %v544_v15, 0.0004427343  ;;  %v516_v39 = vmul.f32 %v2050_v1, %v515_v16  ;;  %v480_v3 = vmul.f32 2.0, %v2390_v53 }
 0x383   :  { %2061 = vlog2.f32 %v520_v7  ;;  %v524_v27 = vadd.f32 1.0, %v523_v11  ;;  %v543_v35 = vmul.f32 %v2052_v4, %v542_v13  ;;  %v486_v9 = vadd.f32 %v482_v62, %v2346_v34 }
 0x384   :  { %vm527_vm14 = vcmp.lt.f32.partialorder %v526_v37, 0.0004427343  ;;  %v484_v11 = vadd.f32 %v480_v3, %v2354_v40 }
 0x385   :  { %v525_v47 = vmul.f32 %v2054_v6, %v524_v27 }
 0x38c   :  { %v2056_v12 = vpop.eup %2055 }
 0x38d   :  { %v2058_v14 = vpop.eup %2057  ;;  %v513_v26 = vmul.f32 0.6931472, %v2056_v12 }
 0x38e   :  { %v2060_v19 = vpop.eup %2059  ;;  %v531_v30 = vmul.f32 0.6931472, %v2058_v14 }
 0x38f   :  { %v540_v33 = vmul.f32 0.6931472, %v2060_v19  ;;  %v519_v31 = vsel %vm518_vm11, %v516_v39, %v513_v26 }
 0x390   :  { %v2062_v41 = vpop.eup %2061  ;;  %v537_v49 = vsel %vm536_vm12, %v534_v42, %v531_v30  ;;  %v547_v54 = vsel %vm495_vm15, %v2386_v51, %v519_v31 }
 0x391   :  { %v546_v43 = vsel %vm545_vm10, %v543_v35, %v540_v33  ;;  %v522_v45 = vmul.f32 0.6931472, %v2062_v41  ;;  %v549_v57 = vsel %vm497_vm1, %v2378_v46, %v537_v49  ;;  %v479_v46 = vmul.f32 2.0, %v2375_v44 }
 0x392   :  { %v550_v50 = vsel %vm498_vm13, %v494_v56, %v546_v43  ;;  %v481_v56 = vmul.f32 2.0, %v2371_v38 }
 0x393   :  { %v528_v52 = vsel %vm527_vm14, %v525_v47, %v522_v45  ;;  %v552_v59 = vpack.c.bf16 %v550_v50, %v549_v57  ;;  %v483_v44 = vadd.f32 %v479_v46, %v2339_v29 }
 0x394   :  { %v548_v55 = vsel %vm496_vm0, %v492_v60, %v528_v52  ;;  %v485_v2 = vadd.f32 %v481_v56, %v2335_v24 }
 0x395   :  { %v551_v58 = vpack.c.bf16 %v548_v55, %v547_v54 }
 0x397   :  { %1910 = vmatprep.mubr.msk.bf16.mxu1 %vm173_vm4, %v551_v58 }
 0x398   :  { %1911 = vmatmul.mubr.msk.bf16.vlgmr.msra.gmra.mxu1 %vm173_vm4, %v552_v59 }
 0x399   :  { %1923 = vmatpush3.bf16.msra.mxu1 %v2271_v21 }
 0x39a   :  { %1924 = vmatprep.subr.bf16.mxu1 %v2276_v22 }
 0x39d   :  { %1925 = vmatpush3.bf16.msra.mxu1 %v2276_v22 }
 0x39e   :  { %1938 = vmatprep.subr.bf16.mxu1 %v2271_v21 }
 0x458   :  { %v1912_v51 = vpop.f32.mrf.mxu1 }
 0x459   :  { %v602_v60 = vadd.f32 %v1912_v51, %v2332_v20 }
 0x45a   :  { %v593_v61 = vpop.f32.mrf.mxu1 }
 0x45b   :  { %v610_v63 = vmul.f32 2.0, %v602_v60  ;;  %v2411_v0 = vadd.f32 %v602_v60, %v2291_v25  ;;  %v594_v1 = vadd.f32 %v2332_v20, %v593_v61 }
 0x45c   :  { %v1913_v4 = vpop.f32.mrf.mxu1 }
 0x45d   :  { %v626_v38 = vmin.f32 %v2411_v0, 20.0  ;;  %v608_v5 = vmul.f32 2.0, %v594_v1  ;;  %v2418_v6 = vadd.f32 %v594_v1, %v2294_v28  ;;  %v605_v48 = vadd.f32 %v1913_v4, %v2332_v20 }
 0x45e   :  { %v596_v7 = vpop.f32.mrf.mxu1  ;;  %v2422_v8 = vadd.f32 %v610_v63, %v485_v2  ;;  %vm622_vm10 = vcmp.gt.f32.partialorder %v2411_v0, 20.0 }
 0x45f   :  { %v632_v10 = vmul.f32 1.442695, %v626_v38  ;;  %v624_v24 = vmin.f32 %v2418_v6, 20.0  ;;  %v597_v53 = vadd.f32 %v2332_v20, %v596_v7  ;;  %v611_v12 = vmul.f32 2.0, %v605_v48 }
 0x460   :  { %v619_v13 = vadd.f32 %v605_v48, %v2297_v32  ;;  %v2429_v14 = vadd.f32 %v608_v5, %v483_v44  ;;  %vm620_vm8 = vcmp.gt.f32.partialorder %v2418_v6, 20.0 }
 0x461   :  { %2063 = vpow2.f32 %v632_v10  ;;  %v628_v29 = vmul.f32 1.442695, %v624_v24  ;;  %v609_v15 = vmul.f32 2.0, %v597_v53  ;;  %v617_v16 = vadd.f32 %v597_v53, %v2300_v36 }
 0x462   :  { %v627_v17 = vmin.f32 %v619_v13, 20.0  ;;  %v2432_v18 = vadd.f32 %v611_v12, %v486_v9  ;;  %vm623_vm6 = vcmp.gt.f32.partialorder %v619_v13, 20.0 }
 0x463   :  { %2065 = vpow2.f32 %v628_v29  ;;  %v625_v34 = vmin.f32 %v617_v16, 20.0  ;;  %v2434_v19 = vadd.f32 %v609_v15, %v484_v11  ;;  %vm621_vm9 = vcmp.gt.f32.partialorder %v617_v16, 20.0 }
 0x464   :  { %v634_v23 = vmul.f32 1.442695, %v627_v17 }
 0x465   :  { %v630_v26 = vmul.f32 1.442695, %v625_v34 }
 0x466   :  { %2067 = vpow2.f32 %v634_v23 }
 0x467   :  { %2069 = vpow2.f32 %v630_v26 }
 0x46e   :  { %v2064_v40 = vpop.eup %2063 }
 0x46f   :  { %v654_v27 = vadd.f32 1.0, %v2064_v40  ;;  %v657_v43 = vmul.f32 -0.5, %v2064_v40  ;;  %v660_v49 = vand.u32 2147483647, %v2064_v40 }
 0x470   :  { %v2066_v30 = vpop.eup %2065 }
 0x471   :  { %v636_v33 = vadd.f32 1.0, %v2066_v30  ;;  %2071 = vlog2.f32 %v654_v27  ;;  %v639_v42 = vmul.f32 -0.5, %v2066_v30  ;;  %v658_v54 = vadd.f32 1.0, %v657_v43 }
 0x472   :  { %v642_v55 = vand.u32 2147483647, %v2066_v30  ;;  %vm2436_vm2 = vcmp.lt.f32.partialorder %v660_v49, 0.0004427343 }
 0x473   :  { %v2068_v35 = vpop.eup %2067  ;;  %2073 = vlog2.f32 %v636_v33  ;;  %v640_v50 = vadd.f32 1.0, %v639_v42  ;;  %v659_v1 = vmul.f32 %v2064_v40, %v658_v54 }
 0x474   :  { %v2070_v37 = vpop.eup %2069  ;;  %v663_v39 = vadd.f32 1.0, %v2068_v35  ;;  %v666_v31 = vmul.f32 -0.5, %v2068_v35  ;;  %v669_v59 = vand.u32 2147483647, %v2068_v35  ;;  %vm2440_vm3 = vcmp.lt.f32.partialorder %v642_v55, 0.0004427343 }
 0x475   :  { %v645_v41 = vadd.f32 1.0, %v2070_v37  ;;  %v648_v45 = vmul.f32 -0.5, %v2070_v37  ;;  %v651_v60 = vand.u32 2147483647, %v2070_v37  ;;  %v641_v62 = vmul.f32 %v2066_v30, %v640_v50 }
 0x476   :  { %2075 = vlog2.f32 %v663_v39  ;;  %v667_v57 = vadd.f32 1.0, %v666_v31  ;;  %vm670_vm5 = vcmp.lt.f32.partialorder %v669_v59, 0.0004427343 }
 0x477   :  { %2077 = vlog2.f32 %v645_v41  ;;  %v649_v56 = vadd.f32 1.0, %v648_v45  ;;  %vm652_vm7 = vcmp.lt.f32.partialorder %v651_v60, 0.0004427343 }
 0x478   :  { %v668_v4 = vmul.f32 %v2068_v35, %v667_v57 }
 0x479   :  { %v650_v44 = vmul.f32 %v2070_v37, %v649_v56 }
 0x47e   :  { %v2072_v47 = vpop.eup %2071 }
 0x47f   :  { %v656_v51 = vmul.f32 0.6931472, %v2072_v47 }
 0x480   :  { %v2074_v52 = vpop.eup %2073 }
 0x481   :  { %v638_v58 = vmul.f32 0.6931472, %v2074_v52  ;;  %v662_v48 = vsel %vm2436_vm2, %v659_v1, %v656_v51 }
 0x482   :  { %v674_v11 = vsel %vm622_vm10, %v2411_v0, %v662_v48 }
 0x483   :  { %v2076_v46 = vpop.eup %2075  ;;  %v644_v38 = vsel %vm2440_vm3, %v641_v62, %v638_v58 }
 0x484   :  { %v2078_v63 = vpop.eup %2077  ;;  %v665_v3 = vmul.f32 0.6931472, %v2076_v46  ;;  %v672_v24 = vsel %vm620_vm8, %v2418_v6, %v644_v38 }
 0x485   :  { %v647_v5 = vmul.f32 0.6931472, %v2078_v63 }
 0x486   :  { %v671_v7 = vsel %vm670_vm5, %v668_v4, %v665_v3 }
 0x487   :  { %v675_v9 = vsel %vm623_vm6, %v619_v13, %v671_v7  ;;  %v653_v10 = vsel %vm652_vm7, %v650_v44, %v647_v5 }
 0x488   :  { %v673_v53 = vsel %vm621_vm9, %v617_v16, %v653_v10  ;;  %v677_v29 = vpack.c.bf16 %v675_v9, %v674_v11 }
 0x489   :  { %v676_v12 = vpack.c.bf16 %v673_v53, %v672_v24 }
 0x48b   :  { %1918 = vmatprep.mubr.msk.bf16.mxu0 %vm173_vm4, %v676_v12 }
 0x48c   :  { %1919 = vmatmul.mubr.msk.bf16.vlgmr.msra.gmra.mxu0 %vm173_vm4, %v677_v29 }
 0x48d   :  { %1931 = vmatpush3.bf16.msra.mxu0 %v2271_v21 }
 0x48e   :  { %1932 = vmatprep.subr.bf16.mxu0 %v2276_v22 }
 0x491   :  { %1933 = vmatpush3.bf16.msra.mxu0 %v2276_v22 }
 0x492   :  { %1946 = vmatprep.subr.bf16.mxu0 %v2271_v21 }
 0x54c   :  { %v1920_v13 = vpop.f32.mrf.mxu0 }
 0x54d   :  { %v727_v6 = vadd.f32 %v1920_v13, %v2332_v20 }
 0x54e   :  { %v718_v15 = vpop.f32.mrf.mxu0 }
 0x54f   :  { %v735_v0 = vadd.f32 %v727_v6, %v2422_v8  ;;  %v719_v16 = vadd.f32 %v2332_v20, %v718_v15 }
 0x550   :  { %v1921_v17 = vpop.f32.mrf.mxu0 }
 0x551   :  { %v739_v34 = vmul.f32 0.16666667, %v735_v0  ;;  %v733_v23 = vadd.f32 %v719_v16, %v2429_v14  ;;  %v730_v26 = vadd.f32 %v1921_v17, %v2332_v20 }
 0x552   :  { %v721_v40 = vpop.f32.mrf.mxu0 }
 0x553   :  { %v2464_v27 = vadd.f32 %v739_v34, %v2291_v25  ;;  %v737_v30 = vmul.f32 0.16666667, %v733_v23  ;;  %v736_v33 = vadd.f32 %v730_v26, %v2432_v18  ;;  %v722_v35 = vadd.f32 %v2332_v20, %v721_v40 }
 0x555   :  { %v751_v37 = vmin.f32 %v2464_v27, 20.0  ;;  %v2470_v8 = vadd.f32 %v737_v30, %v2294_v28  ;;  %v740_v39 = vmul.f32 0.16666667, %v736_v33  ;;  %v734_v41 = vadd.f32 %v722_v35, %v2434_v19  ;;  %1753 = vrot.lane.b32.xlu1 %v2464_v27, %s2212_s13 }
 0x556   :  { %vm747_vm2 = vcmp.gt.f32.partialorder %v2464_v27, 20.0 }
 0x557   :  { %v757_v14 = vmul.f32 1.442695, %v751_v37  ;;  %v749_v25 = vmin.f32 %v2470_v8, 20.0  ;;  %v2476_v42 = vadd.f32 %v740_v39, %v2297_v32  ;;  %v738_v18 = vmul.f32 0.16666667, %v734_v41 }
 0x558   :  { %vm745_vm0 = vcmp.gt.f32.partialorder %v2470_v8, 20.0 }
 0x559   :  { %2079 = vpow2.f32 %v757_v14  ;;  %v753_v43 = vmul.f32 1.442695, %v749_v25  ;;  %v752_v31 = vmin.f32 %v2476_v42, 20.0  ;;  %v2480_v28 = vadd.f32 %v738_v18, %v2300_v36  ;;  %1755 = vrot.lane.b32.xlu0 %v2476_v42, %s2212_s13  ;;  %1749 = vrot.lane.b32.xlu1 %v2470_v8, %s2212_s13 }
 0x55a   :  { %vm748_vm15 = vcmp.gt.f32.partialorder %v2476_v42, 20.0 }
 0x55b   :  { %2081 = vpow2.f32 %v753_v43  ;;  %v759_v19 = vmul.f32 1.442695, %v752_v31  ;;  %v750_v45 = vmin.f32 %v2480_v28, 20.0  ;;  %vm746_vm1 = vcmp.gt.f32.partialorder %v2480_v28, 20.0 }
 0x55d   :  { %2083 = vpow2.f32 %v759_v19  ;;  %v755_v47 = vmul.f32 1.442695, %v750_v45  ;;  %1751 = vrot.lane.b32.xlu0 %v2480_v28, %s2212_s13 }
 0x55f   :  { %2085 = vpow2.f32 %v755_v47 }
 0x566   :  { %v2080_v32 = vpop.eup %2079 }
 0x567   :  { %v779_v49 = vadd.f32 1.0, %v2080_v32  ;;  %v782_v59 = vmul.f32 -0.5, %v2080_v32  ;;  %v785_v61 = vand.u32 2147483647, %v2080_v32 }
 0x568   :  { %v2082_v50 = vpop.eup %2081 }
 0x569   :  { %v761_v52 = vadd.f32 1.0, %v2082_v50  ;;  %2087 = vlog2.f32 %v779_v49  ;;  %v764_v58 = vmul.f32 -0.5, %v2082_v50  ;;  %v767_v63 = vand.u32 2147483647, %v2082_v50 }
 0x56a   :  { %v2084_v54 = vpop.eup %2083  ;;  %v783_v1 = vadd.f32 1.0, %v782_v59  ;;  %vm2486_vm11 = vcmp.lt.f32.partialorder %v785_v61, 0.0004427343 }
 0x56b   :  { %2089 = vlog2.f32 %v761_v52  ;;  %v788_v36 = vadd.f32 1.0, %v2084_v54  ;;  %v791_v56 = vmul.f32 -0.5, %v2084_v54  ;;  %v765_v46 = vadd.f32 1.0, %v764_v58 }
 0x56c   :  { %v2086_v55 = vpop.eup %2085  ;;  %v794_v38 = vand.u32 2147483647, %v2084_v54  ;;  %vm2490_vm12 = vcmp.lt.f32.partialorder %v767_v63, 0.0004427343  ;;  %v784_v53 = vmul.f32 %v2080_v32, %v783_v1 }
 0x56d   :  { %v770_v57 = vadd.f32 1.0, %v2086_v55  ;;  %2091 = vlog2.f32 %v788_v36  ;;  %v773_v51 = vmul.f32 -0.5, %v2086_v55  ;;  %v792_v2 = vadd.f32 1.0, %v791_v56 }
 0x56e   :  { %v776_v5 = vand.u32 2147483647, %v2086_v55  ;;  %v766_v7 = vmul.f32 %v2082_v50, %v765_v46  ;;  %vm795_vm13 = vcmp.lt.f32.partialorder %v794_v38, 0.0004427343 }
 0x56f   :  { %2093 = vlog2.f32 %v770_v57  ;;  %v774_v4 = vadd.f32 1.0, %v773_v51  ;;  %v793_v12 = vmul.f32 %v2084_v54, %v792_v2 }
 0x570   :  { %vm777_vm14 = vcmp.lt.f32.partialorder %v776_v5, 0.0004427343 }
 0x571   :  { %v775_v6 = vmul.f32 %v2086_v55, %v774_v4 }
 0x576   :  { %v2088_v60 = vpop.eup %2087 }
 0x577   :  { %v781_v44 = vmul.f32 0.6931472, %v2088_v60 }
 0x578   :  { %v2090_v62 = vpop.eup %2089 }
 0x579   :  { %v763_v3 = vmul.f32 0.6931472, %v2090_v62  ;;  %v787_v15 = vsel %vm2486_vm11, %v784_v53, %v781_v44 }
 0x57a   :  { %v2092_v48 = vpop.eup %2091  ;;  %v799_v40 = vsel %vm747_vm2, %v2464_v27, %v787_v15 }
 0x57b   :  { %v790_v11 = vmul.f32 0.6931472, %v2092_v48  ;;  %v769_v29 = vsel %vm2490_vm12, %v766_v7, %v763_v3 }
 0x57c   :  { %v2094_v10 = vpop.eup %2093  ;;  %v797_v34 = vsel %vm745_vm0, %v2470_v8, %v769_v29 }
 0x57d   :  { %v772_v13 = vmul.f32 0.6931472, %v2094_v10  ;;  %v796_v0 = vsel %vm795_vm13, %v793_v12, %v790_v11 }
 0x57e   :  { %v800_v17 = vsel %vm748_vm15, %v2476_v42, %v796_v0 }
 0x57f   :  { %v778_v16 = vsel %vm777_vm14, %v775_v6, %v772_v13  ;;  %v802_v30 = vpack.c.bf16 %v800_v17, %v799_v40 }
 0x580   :  { %v798_v23 = vsel %vm746_vm1, %v2480_v28, %v778_v16 }
 0x581   :  { %v801_v26 = vpack.c.bf16 %v798_v23, %v797_v34 }
 0x583   :  { %1926 = vmatprep.mubr.msk.bf16.mxu1 %vm173_vm4, %v801_v26 }
 0x584   :  { %1927 = vmatmul.mubr.msk.bf16.vlgmr.msra.gmra.mxu1 %vm173_vm4, %v802_v30 }
 0x585   :  { %1939 = vmatpush3.bf16.msra.mxu1 %v2271_v21 }
 0x586   :  { %1940 = vmatprep.subr.bf16.mxu1 %v2276_v22 }
 0x589   :  { %1941 = vmatpush3.bf16.msra.mxu1 %v2276_v22 }
 0x58a   :  { %1954 = vmatprep.subr.bf16.mxu1 %v2271_v21 }
 0x644   :  { %v1928_v33 = vpop.f32.mrf.mxu1 }
 0x645   :  { %v2513_v35 = vadd.f32 %v1928_v33, %v2332_v20 }
 0x646   :  { %v843_v37 = vpop.f32.mrf.mxu1 }
 0x647   :  { %v860_v39 = vmul.f32 0.5, %v2513_v35  ;;  %v2517_v41 = vadd.f32 %v2332_v20, %v843_v37 }
 0x648   :  { %v1929_v14 = vpop.f32.mrf.mxu1 }
 0x649   :  { %v2520_v25 = vadd.f32 %v860_v39, %v2464_v27  ;;  %v858_v18 = vmul.f32 0.5, %v2517_v41  ;;  %v2524_v22 = vadd.f32 %v1929_v14, %v2332_v20 }
 0x64a   :  { %v846_v21 = vpop.f32.mrf.mxu1 }
 0x64b   :  { %v872_v43 = vmin.f32 %v2520_v25, 20.0  ;;  %v2528_v31 = vadd.f32 %v858_v18, %v2470_v8  ;;  %v861_v19 = vmul.f32 0.5, %v2524_v22  ;;  %v2532_v45 = vadd.f32 %v2332_v20, %v846_v21 }
 0x64c   :  { %vm868_vm11 = vcmp.gt.f32.partialorder %v2520_v25, 20.0 }
 0x64d   :  { %v878_v47 = vmul.f32 1.442695, %v872_v43  ;;  %v870_v32 = vmin.f32 %v2528_v31, 20.0  ;;  %v865_v49 = vadd.f32 %v861_v19, %v2476_v42  ;;  %v859_v50 = vmul.f32 0.5, %v2532_v45  ;;  %v2547_v19 = vld [vmem:[%s2858_s2 + $0x8] sm:$0xff]  }
 0x64e   :  { %vm866_vm9 = vcmp.gt.f32.partialorder %v2528_v31, 20.0 }
 0x64f   :  { %2095 = vpow2.f32 %v878_v47  ;;  %v874_v52 = vmul.f32 1.442695, %v870_v32  ;;  %v873_v54 = vmin.f32 %v865_v49, 20.0  ;;  %v863_v36 = vadd.f32 %v859_v50, %v2480_v28 }
 0x650   :  { %vm869_vm7 = vcmp.gt.f32.partialorder %v865_v49, 20.0 }
 0x651   :  { %2097 = vpow2.f32 %v874_v52  ;;  %v880_v55 = vmul.f32 1.442695, %v873_v54  ;;  %v871_v57 = vmin.f32 %v863_v36, 20.0  ;;  %vm867_vm10 = vcmp.gt.f32.partialorder %v863_v36, 20.0 }
 0x653   :  { %2099 = vpow2.f32 %v880_v55  ;;  %v876_v58 = vmul.f32 1.442695, %v871_v57 }
 0x655   :  { %2101 = vpow2.f32 %v876_v58 }
 0x65c   :  { %v2096_v59 = vpop.eup %2095 }
 0x65d   :  { %v900_v56 = vadd.f32 1.0, %v2096_v59  ;;  %v903_v3 = vmul.f32 -0.5, %v2096_v59  ;;  %v906_v53 = vand.u32 2147483647, %v2096_v59 }
 0x65e   :  { %v2098_v51 = vpop.eup %2097 }
 0x65f   :  { %v882_v60 = vadd.f32 1.0, %v2098_v51  ;;  %2103 = vlog2.f32 %v900_v56  ;;  %v885_v2 = vmul.f32 -0.5, %v2098_v51  ;;  %v904_v9 = vadd.f32 1.0, %v903_v3 }
 0x660   :  { %v2100_v46 = vpop.eup %2099  ;;  %v888_v10 = vand.u32 2147483647, %v2098_v51  ;;  %vm907_vm6 = vcmp.lt.f32.partialorder %v906_v53, 0.0004427343 }
 0x661   :  { %v909_v61 = vadd.f32 1.0, %v2100_v46  ;;  %2105 = vlog2.f32 %v882_v60  ;;  %v912_v1 = vmul.f32 -0.5, %v2100_v46  ;;  %v915_v44 = vand.u32 2147483647, %v2100_v46 }
 0x662   :  { %v2102_v62 = vpop.eup %2101  ;;  %v886_v48 = vadd.f32 1.0, %v885_v2  ;;  %v905_v17 = vmul.f32 %v2096_v59, %v904_v9  ;;  %vm889_vm5 = vcmp.lt.f32.partialorder %v888_v10, 0.0004427343 }
 0x663   :  { %2107 = vlog2.f32 %v909_v61  ;;  %v891_v63 = vadd.f32 1.0, %v2102_v62  ;;  %v894_v4 = vmul.f32 -0.5, %v2102_v62  ;;  %v913_v38 = vadd.f32 1.0, %v912_v1 }
 0x664   :  { %v897_v15 = vand.u32 2147483647, %v2102_v62  ;;  %vm916_vm3 = vcmp.lt.f32.partialorder %v915_v44, 0.0004427343  ;;  %v887_v0 = vmul.f32 %v2098_v51, %v886_v48 }
 0x665   :  { %2109 = vlog2.f32 %v891_v63  ;;  %v895_v12 = vadd.f32 1.0, %v894_v4  ;;  %v914_v6 = vmul.f32 %v2100_v46, %v913_v38 }
 0x666   :  { %vm898_vm8 = vcmp.lt.f32.partialorder %v897_v15, 0.0004427343 }
 0x667   :  { %v896_v40 = vmul.f32 %v2102_v62, %v895_v12 }
 0x66c   :  { %v2104_v5 = vpop.eup %2103 }
 0x66d   :  { %v902_v29 = vmul.f32 0.6931472, %v2104_v5 }
 0x66e   :  { %v2106_v7 = vpop.eup %2105 }
 0x66f   :  { %v884_v11 = vmul.f32 0.6931472, %v2106_v7  ;;  %v908_v30 = vsel %vm907_vm6, %v905_v17, %v902_v29 }
 0x670   :  { %v2108_v24 = vpop.eup %2107  ;;  %v920_v18 = vsel %vm868_vm11, %v2520_v25, %v908_v30 }
 0x671   :  { %v911_v13 = vmul.f32 0.6931472, %v2108_v24  ;;  %v890_v23 = vsel %vm889_vm5, %v887_v0, %v884_v11 }
 0x672   :  { %v2110_v16 = vpop.eup %2109  ;;  %v918_v39 = vsel %vm866_vm9, %v2528_v31, %v890_v23  ;;  %v2553_v31 = vld [vmem:[%s2858_s2] sm:$0xff]  }
 0x673   :  { %v917_v34 = vsel %vm916_vm3, %v914_v6, %v911_v13  ;;  %v893_v26 = vmul.f32 0.6931472, %v2110_v16 }
 0x674   :  { %v921_v33 = vsel %vm869_vm7, %v865_v49, %v917_v34 }
 0x675   :  { %v899_v37 = vsel %vm898_vm8, %v896_v40, %v893_v26  ;;  %v923_v43 = vpack.c.bf16 %v921_v33, %v920_v18 }
 0x676   :  { %v919_v14 = vsel %vm867_vm10, %v863_v36, %v899_v37 }
 0x677   :  { %v922_v21 = vpack.c.bf16 %v919_v14, %v918_v39 }
 0x679   :  { %1934 = vmatprep.mubr.msk.bf16.mxu0 %vm173_vm4, %v922_v21 }
 0x67a   :  { %1935 = vmatmul.mubr.msk.bf16.vlgmr.msra.gmra.mxu0 %vm173_vm4, %v923_v43 }
 0x67b   :  { %1947 = vmatpush3.bf16.msra.mxu0 %v2547_v19 }
 0x67c   :  { %1948 = vmatprep.subr.bf16.mxu0 %v2553_v31 }
 0x67f   :  { %1949 = vmatpush3.bf16.msra.mxu0 %v2553_v31 }
 0x680   :  { %1962 = vmatprep.subr.bf16.mxu0 %v2547_v19 }
 0x73a   :  { %v1936_v25 = vpop.f32.mrf.mxu0 }
 0x73b   :  { %v2559_v47 = vadd.f32 %v1936_v25, %v2332_v20 }
 0x73c   :  { %v964_v32 = vpop.f32.mrf.mxu0 }
 0x73d   :  { %v989_v49 = vmul.f32 0.5, %v2559_v47  ;;  %v2563_v50 = vadd.f32 %v2332_v20, %v964_v32 }
 0x73e   :  { %v1937_v52 = vpop.f32.mrf.mxu0 }
 0x73f   :  { %v2566_v54 = vadd.f32 %v989_v49, %v2464_v27  ;;  %v987_v36 = vmul.f32 0.5, %v2563_v50  ;;  %v2570_v55 = vadd.f32 %v1937_v52, %v2332_v20 }
 0x740   :  { %v967_v57 = vpop.f32.mrf.mxu0 }
 0x741   :  { %v1001_v58 = vmin.f32 %v2566_v54, 20.0  ;;  %v2574_v59 = vadd.f32 %v987_v36, %v2470_v8  ;;  %v990_v56 = vmul.f32 0.5, %v2570_v55  ;;  %v2578_v51 = vadd.f32 %v2332_v20, %v967_v57 }
 0x742   :  { %vm997_vm3 = vcmp.gt.f32.partialorder %v2566_v54, 20.0 }
 0x743   :  { %v1007_v60 = vmul.f32 1.442695, %v1001_v58  ;;  %v999_v46 = vmin.f32 %v2574_v59, 20.0  ;;  %v994_v61 = vadd.f32 %v990_v56, %v2476_v42  ;;  %v988_v62 = vmul.f32 0.5, %v2578_v51 }
 0x744   :  { %vm995_vm1 = vcmp.gt.f32.partialorder %v2574_v59, 20.0 }
 0x745   :  { %2111 = vpow2.f32 %v1007_v60  ;;  %v1003_v63 = vmul.f32 1.442695, %v999_v46  ;;  %v1002_v1 = vmin.f32 %v994_v61, 20.0  ;;  %v992_v2 = vadd.f32 %v988_v62, %v2480_v28 }
 0x746   :  { %vm998_vm15 = vcmp.gt.f32.partialorder %v994_v61, 20.0 }
 0x747   :  { %2113 = vpow2.f32 %v1003_v63  ;;  %v1009_v3 = vmul.f32 1.442695, %v1002_v1  ;;  %v1000_v4 = vmin.f32 %v992_v2, 20.0  ;;  %vm996_vm2 = vcmp.gt.f32.partialorder %v992_v2, 20.0 }
 0x749   :  { %2115 = vpow2.f32 %v1009_v3  ;;  %v1005_v38 = vmul.f32 1.442695, %v1000_v4  ;;  %v982_v4 = vmul.f32 2.0, %v2570_v55 }
 0x74b   :  { %2117 = vpow2.f32 %v1005_v38 }
 0x752   :  { %v2112_v20 = vpop.eup %2111 }
 0x753   :  { %v1029_v44 = vadd.f32 1.0, %v2112_v20  ;;  %v1032_v12 = vmul.f32 -0.5, %v2112_v20  ;;  %v1035_v26 = vand.u32 2147483647, %v2112_v20 }
 0x754   :  { %v2114_v5 = vpop.eup %2113 }
 0x755   :  { %v1011_v48 = vadd.f32 1.0, %v2114_v5  ;;  %v1014_v11 = vmul.f32 -0.5, %v2114_v5  ;;  %v1033_v17 = vadd.f32 1.0, %v1032_v12  ;;  %v1017_v34 = vand.u32 2147483647, %v2114_v5 }
 0x756   :  { %v2116_v7 = vpop.eup %2115  ;;  %vm1036_vm14 = vcmp.lt.f32.partialorder %v1035_v26, 0.0004427343 }
 0x757   :  { %2119 = vlog2.f32 %v1011_v48  ;;  %v1038_v9 = vadd.f32 1.0, %v2116_v7  ;;  %v1041_v53 = vmul.f32 -0.5, %v2116_v7  ;;  %v1044_v0 = vand.u32 2147483647, %v2116_v7 }
 0x758   :  { %2121 = vlog2.f32 %v1029_v44  ;;  %v2118_v10 = vpop.eup %2117  ;;  %v1015_v16 = vadd.f32 1.0, %v1014_v11  ;;  %v1034_v43 = vmul.f32 %v2112_v20, %v1033_v17  ;;  %vm1018_vm13 = vcmp.lt.f32.partialorder %v1017_v34, 0.0004427343 }
 0x759   :  { %2123 = vlog2.f32 %v1038_v9  ;;  %v1020_v24 = vadd.f32 1.0, %v2118_v10  ;;  %v1023_v29 = vmul.f32 -0.5, %v2118_v10  ;;  %v1042_v6 = vadd.f32 1.0, %v1041_v53 }
 0x75a   :  { %v1026_v14 = vand.u32 2147483647, %v2118_v10  ;;  %vm1045_vm12 = vcmp.lt.f32.partialorder %v1044_v0, 0.0004427343  ;;  %v1016_v18 = vmul.f32 %v2114_v5, %v1015_v16  ;;  %v980_v44 = vmul.f32 2.0, %v2578_v51 }
 0x75b   :  { %2125 = vlog2.f32 %v1020_v24  ;;  %v1024_v30 = vadd.f32 1.0, %v1023_v29  ;;  %v1043_v39 = vmul.f32 %v2116_v7, %v1042_v6  ;;  %v986_v11 = vadd.f32 %v982_v4, %v2524_v22 }
 0x75c   :  { %vm1027_vm0 = vcmp.lt.f32.partialorder %v1026_v14, 0.0004427343  ;;  %v984_v29 = vadd.f32 %v980_v44, %v2532_v45 }
 0x75d   :  { %v1025_v52 = vmul.f32 %v2118_v10, %v1024_v30 }
 0x764   :  { %v2120_v13 = vpop.eup %2119 }
 0x765   :  { %v2122_v15 = vpop.eup %2121  ;;  %v1013_v40 = vmul.f32 0.6931472, %v2120_v13 }
 0x766   :  { %v2124_v23 = vpop.eup %2123  ;;  %v1031_v33 = vmul.f32 0.6931472, %v2122_v15 }
 0x767   :  { %v1040_v37 = vmul.f32 0.6931472, %v2124_v23  ;;  %v1019_v32 = vsel %vm1018_vm13, %v1016_v18, %v1013_v40 }
 0x768   :  { %v2126_v21 = vpop.eup %2125  ;;  %v1037_v36 = vsel %vm1036_vm14, %v1034_v43, %v1031_v33  ;;  %v1047_v56 = vsel %vm995_vm1, %v2574_v59, %v1019_v32 }
 0x769   :  { %v1046_v25 = vsel %vm1045_vm12, %v1043_v39, %v1040_v37  ;;  %v1022_v49 = vmul.f32 0.6931472, %v2126_v21  ;;  %v1049_v46 = vsel %vm997_vm3, %v2566_v54, %v1037_v36  ;;  %v2598_v54 = vld [vmem:[%s2857_s3 + $0x20] ss:$0 sm:$0xff]  ;;  %s2213_s3 = smov 32  }
 0x76a   :  { %v1050_v57 = vsel %vm998_vm15, %v994_v61, %v1046_v25  ;;  %v981_v61 = vmul.f32 2.0, %v2559_v47 }
 0x76b   :  { %v1028_v58 = vsel %vm1027_vm0, %v1025_v52, %v1022_v49  ;;  %v1052_v63 = vpack.c.bf16 %v1050_v57, %v1049_v46 }
 0x76c   :  { %v1048_v60 = vsel %vm996_vm2, %v992_v2, %v1028_v58  ;;  %v979_v2 = vmul.f32 2.0, %v2563_v50  ;;  %v985_v47 = vadd.f32 %v981_v61, %v2513_v35 }
 0x76d   :  { %v1051_v62 = vpack.c.bf16 %v1048_v60, %v1047_v56 }
 0x76e   :  { %v983_v50 = vadd.f32 %v979_v2, %v2517_v41 }
 0x76f   :  { %1942 = vmatprep.mubr.msk.bf16.mxu1 %vm173_vm4, %v1051_v62 }
 0x770   :  { %1943 = vmatmul.mubr.msk.bf16.vlgmr.msra.gmra.mxu1 %vm173_vm4, %v1052_v63 }
 0x771   :  { %1955 = vmatpush3.bf16.msra.mxu1 %v2547_v19 }
 0x772   :  { %1956 = vmatprep.subr.bf16.mxu1 %v2553_v31 }
 0x775   :  { %1957 = vmatpush3.bf16.msra.mxu1 %v2553_v31 }
 0x776   :  { %1970 = vmatprep.subr.bf16.mxu1 %v2547_v19 }
 0x830   :  { %v1944_v59 = vpop.f32.mrf.mxu1 }
 0x831   :  { %v1102_v1 = vadd.f32 %v2598_v54, %v1944_v59 }
 0x832   :  { %v1093_v3 = vpop.f32.mrf.mxu1 }
 0x833   :  { %v1110_v38 = vmul.f32 2.0, %v1102_v1  ;;  %v2604_v20 = vadd.f32 %v1102_v1, %v2464_v27  ;;  %v1094_v5 = vadd.f32 %v2598_v54, %v1093_v3 }
 0x834   :  { %v1945_v48 = vpop.f32.mrf.mxu1 }
 0x835   :  { %v1126_v7 = vmin.f32 %v2604_v20, 20.0  ;;  %v1108_v9 = vmul.f32 2.0, %v1094_v5  ;;  %v2611_v10 = vadd.f32 %v1094_v5, %v2470_v8  ;;  %v1105_v55 = vadd.f32 %v2598_v54, %v1945_v48 }
 0x836   :  { %v1096_v24 = vpop.f32.mrf.mxu1  ;;  %v2615_v53 = vadd.f32 %v1110_v38, %v985_v47  ;;  %vm1122_vm12 = vcmp.gt.f32.partialorder %v2604_v20, 20.0 }
 0x837   :  { %v1132_v12 = vmul.f32 1.442695, %v1126_v7  ;;  %v1124_v35 = vmin.f32 %v2611_v10, 20.0  ;;  %v1097_v51 = vadd.f32 %v2598_v54, %v1096_v24  ;;  %v1111_v13 = vmul.f32 2.0, %v1105_v55 }
 0x838   :  { %v1119_v6 = vadd.f32 %v1105_v55, %v2476_v42  ;;  %v2622_v15 = vadd.f32 %v1108_v9, %v983_v50  ;;  %vm1120_vm10 = vcmp.gt.f32.partialorder %v2611_v10, 20.0 }
 0x839   :  { %2127 = vpow2.f32 %v1132_v12  ;;  %v1128_v41 = vmul.f32 1.442695, %v1124_v35  ;;  %v1109_v0 = vmul.f32 2.0, %v1097_v51  ;;  %v1117_v16 = vadd.f32 %v1097_v51, %v2480_v28 }
 0x83a   :  { %v1127_v17 = vmin.f32 %v1119_v6, 20.0  ;;  %v2625_v34 = vadd.f32 %v1111_v13, %v986_v11  ;;  %vm1123_vm8 = vcmp.gt.f32.partialorder %v1119_v6, 20.0 }
 0x83b   :  { %2129 = vpow2.f32 %v1128_v41  ;;  %v1125_v22 = vmin.f32 %v1117_v16, 20.0  ;;  %v2627_v23 = vadd.f32 %v1109_v0, %v984_v29  ;;  %vm1121_vm11 = vcmp.gt.f32.partialorder %v1117_v16, 20.0 }
 0x83c   :  { %v1134_v26 = vmul.f32 1.442695, %v1127_v17 }
 0x83d   :  { %v1130_v40 = vmul.f32 1.442695, %v1125_v22 }
 0x83e   :  { %2131 = vpow2.f32 %v1134_v26 }
 0x83f   :  { %2133 = vpow2.f32 %v1130_v40 }
 0x846   :  { %v2128_v45 = vpop.eup %2127 }
 0x847   :  { %v1154_v30 = vadd.f32 1.0, %v2128_v45  ;;  %v1157_v25 = vmul.f32 -0.5, %v2128_v45  ;;  %v1160_v36 = vand.u32 2147483647, %v2128_v45 }
 0x848   :  { %v2130_v33 = vpop.eup %2129 }
 0x849   :  { %v1136_v37 = vadd.f32 1.0, %v2130_v33  ;;  %2135 = vlog2.f32 %v1154_v30  ;;  %v1139_v43 = vmul.f32 -0.5, %v2130_v33  ;;  %v1158_v56 = vadd.f32 1.0, %v1157_v25 }
 0x84a   :  { %v1142_v60 = vand.u32 2147483647, %v2130_v33  ;;  %vm2629_vm5 = vcmp.lt.f32.partialorder %v1160_v36, 0.0004427343 }
 0x84b   :  { %v2132_v39 = vpop.eup %2131  ;;  %2137 = vlog2.f32 %v1136_v37  ;;  %v1140_v57 = vadd.f32 1.0, %v1139_v43  ;;  %v1159_v5 = vmul.f32 %v2128_v45, %v1158_v56 }
 0x84c   :  { %v2134_v14 = vpop.eup %2133  ;;  %v1163_v18 = vadd.f32 1.0, %v2132_v39  ;;  %v1166_v32 = vmul.f32 -0.5, %v2132_v39  ;;  %v1169_v63 = vand.u32 2147483647, %v2132_v39  ;;  %vm2633_vm6 = vcmp.lt.f32.partialorder %v1142_v60, 0.0004427343 }
 0x84d   :  { %v1145_v21 = vadd.f32 1.0, %v2134_v14  ;;  %v1148_v49 = vmul.f32 -0.5, %v2134_v14  ;;  %v1151_v1 = vand.u32 2147483647, %v2134_v14  ;;  %v1141_v4 = vmul.f32 %v2130_v33, %v1140_v57 }
 0x84e   :  { %2139 = vlog2.f32 %v1163_v18  ;;  %v1167_v46 = vadd.f32 1.0, %v1166_v32  ;;  %vm1170_vm7 = vcmp.lt.f32.partialorder %v1169_v63, 0.0004427343 }
 0x84f   :  { %2141 = vlog2.f32 %v1145_v21  ;;  %v1149_v61 = vadd.f32 1.0, %v1148_v49  ;;  %vm1152_vm9 = vcmp.lt.f32.partialorder %v1151_v1, 0.0004427343 }
 0x850   :  { %v1168_v48 = vmul.f32 %v2132_v39, %v1167_v46 }
 0x851   :  { %v1150_v50 = vmul.f32 %v2134_v14, %v1149_v61 }
 0x856   :  { %v2136_v52 = vpop.eup %2135 }
 0x857   :  { %v1156_v59 = vmul.f32 0.6931472, %v2136_v52 }
 0x858   :  { %v2138_v58 = vpop.eup %2137 }
 0x859   :  { %v1138_v62 = vmul.f32 0.6931472, %v2138_v58  ;;  %v1162_v55 = vsel %vm2629_vm5, %v1159_v5, %v1156_v59 }
 0x85a   :  { %v1174_v29 = vsel %vm1122_vm12, %v2604_v20, %v1162_v55 }
 0x85b   :  { %v2140_v2 = vpop.eup %2139  ;;  %v1144_v7 = vsel %vm2633_vm6, %v1141_v4, %v1138_v62 }
 0x85c   :  { %v2142_v38 = vpop.eup %2141  ;;  %v1165_v44 = vmul.f32 0.6931472, %v2140_v2  ;;  %v1172_v35 = vsel %vm1120_vm10, %v2611_v10, %v1144_v7 }
 0x85d   :  { %v1147_v9 = vmul.f32 0.6931472, %v2142_v38 }
 0x85e   :  { %v1171_v24 = vsel %vm1170_vm7, %v1168_v48, %v1165_v44 }
 0x85f   :  { %v1175_v11 = vsel %vm1123_vm8, %v1119_v6, %v1171_v24  ;;  %v1153_v12 = vsel %vm1152_vm9, %v1150_v50, %v1147_v9 }
 0x860   :  { %v1173_v51 = vsel %vm1121_vm11, %v1117_v16, %v1153_v12  ;;  %v1177_v41 = vpack.c.bf16 %v1175_v11, %v1174_v29 }
 0x861   :  { %v1176_v13 = vpack.c.bf16 %v1173_v51, %v1172_v35 }
 0x863   :  { %1950 = vmatprep.mubr.msk.bf16.mxu0 %vm173_vm4, %v1176_v13 }
 0x864   :  { %1951 = vmatmul.mubr.msk.bf16.vlgmr.msra.gmra.mxu0 %vm173_vm4, %v1177_v41 }
 0x865   :  { %1963 = vmatpush3.bf16.msra.mxu0 %v2547_v19 }
 0x866   :  { %1964 = vmatprep.subr.bf16.mxu0 %v2553_v31 }
 0x869   :  { %1965 = vmatpush3.bf16.msra.mxu0 %v2553_v31 }
 0x86a   :  { %1978 = vmatprep.subr.bf16.mxu0 %v2547_v19 }
 0x924   :  { %v1952_v6 = vpop.f32.mrf.mxu0 }
 0x925   :  { %v1227_v10 = vadd.f32 %v2598_v54, %v1952_v6 }
 0x926   :  { %v1218_v0 = vpop.f32.mrf.mxu0 }
 0x927   :  { %v1235_v20 = vadd.f32 %v1227_v10, %v2615_v53  ;;  %v1219_v16 = vadd.f32 %v2598_v54, %v1218_v0 }
 0x928   :  { %v1953_v17 = vpop.f32.mrf.mxu0 }
 0x929   :  { %v1239_v22 = vmul.f32 0.16666667, %v1235_v20  ;;  %v1233_v26 = vadd.f32 %v1219_v16, %v2622_v15  ;;  %v1230_v40 = vadd.f32 %v2598_v54, %v1953_v17 }
 0x92a   :  { %v1221_v45 = vpop.f32.mrf.mxu0 }
 0x92b   :  { %v2657_v30 = vadd.f32 %v1239_v22, %v2464_v27  ;;  %v1237_v33 = vmul.f32 0.16666667, %v1233_v26  ;;  %v1236_v37 = vadd.f32 %v1230_v40, %v2625_v34  ;;  %v1222_v39 = vadd.f32 %v2598_v54, %v1221_v45 }
 0x92d   :  { %v1251_v14 = vmin.f32 %v2657_v30, 20.0  ;;  %v2663_v53 = vadd.f32 %v1237_v33, %v2470_v8  ;;  %v1240_v18 = vmul.f32 0.16666667, %v1236_v37  ;;  %v1234_v21 = vadd.f32 %v1222_v39, %v2627_v23 }
 0x92e   :  { %vm1247_vm5 = vcmp.gt.f32.partialorder %v2657_v30, 20.0 }
 0x92f   :  { %v1257_v15 = vmul.f32 1.442695, %v1251_v14  ;;  %v1249_v43 = vmin.f32 %v2663_v53, 20.0  ;;  %v2668_v25 = vadd.f32 %v1240_v18, %v2476_v42  ;;  %v1238_v27 = vmul.f32 0.16666667, %v1234_v21 }
 0x930   :  { %vm1245_vm2 = vcmp.gt.f32.partialorder %v2663_v53, 20.0 }
 0x931   :  { %2143 = vpow2.f32 %v1257_v15  ;;  %v1253_v32 = vmul.f32 1.442695, %v1249_v43  ;;  %v1252_v34 = vmin.f32 %v2668_v25, 20.0  ;;  %v2672_v49 = vadd.f32 %v1238_v27, %v2480_v28 }
 0x932   :  { %vm1248_vm1 = vcmp.gt.f32.partialorder %v2668_v25, 20.0 }
 0x933   :  { %2145 = vpow2.f32 %v1253_v32  ;;  %v1259_v8 = vmul.f32 1.442695, %v1252_v34  ;;  %v1250_v52 = vmin.f32 %v2672_v49, 20.0  ;;  %vm1246_vm3 = vcmp.gt.f32.partialorder %v2672_v49, 20.0 }
 0x935   :  { %2147 = vpow2.f32 %v1259_v8  ;;  %v1255_v23 = vmul.f32 1.442695, %v1250_v52 }
 0x937   :  { %2149 = vpow2.f32 %v1255_v23 }
 0x93e   :  { %v2144_v36 = vpop.eup %2143 }
 0x93f   :  { %v1279_v57 = vadd.f32 1.0, %v2144_v36  ;;  %v1282_v63 = vmul.f32 -0.5, %v2144_v36  ;;  %v1285_v3 = vand.u32 2147483647, %v2144_v36 }
 0x940   :  { %v2146_v58 = vpop.eup %2145 }
 0x941   :  { %v1261_v42 = vadd.f32 1.0, %v2146_v58  ;;  %2151 = vlog2.f32 %v1279_v57  ;;  %v1264_v28 = vmul.f32 -0.5, %v2146_v58  ;;  %v1267_v38 = vand.u32 2147483647, %v2146_v58 }
 0x942   :  { %v2148_v56 = vpop.eup %2147  ;;  %v1283_v5 = vadd.f32 1.0, %v1282_v63  ;;  %vm2675_vm13 = vcmp.lt.f32.partialorder %v1285_v3, 0.0004427343 }
 0x943   :  { %2153 = vlog2.f32 %v1261_v42  ;;  %v1288_v60 = vadd.f32 1.0, %v2148_v56  ;;  %v1291_v61 = vmul.f32 -0.5, %v2148_v56  ;;  %v1265_v2 = vadd.f32 1.0, %v1264_v28 }
 0x944   :  { %v2150_v46 = vpop.eup %2149  ;;  %v1294_v7 = vand.u32 2147483647, %v2148_v56  ;;  %vm2679_vm14 = vcmp.lt.f32.partialorder %v1267_v38, 0.0004427343  ;;  %v1284_v51 = vmul.f32 %v2144_v36, %v1283_v5 }
 0x945   :  { %v1270_v62 = vadd.f32 1.0, %v2150_v46  ;;  %2155 = vlog2.f32 %v1288_v60  ;;  %v1273_v59 = vmul.f32 -0.5, %v2150_v46  ;;  %v1292_v47 = vadd.f32 1.0, %v1291_v61 }
 0x946   :  { %v1276_v9 = vand.u32 2147483647, %v2150_v46  ;;  %v1266_v24 = vmul.f32 %v2146_v58, %v1265_v2  ;;  %vm1295_vm15 = vcmp.lt.f32.partialorder %v1294_v7, 0.0004427343 }
 0x947   :  { %2157 = vlog2.f32 %v1270_v62  ;;  %v1274_v48 = vadd.f32 1.0, %v1273_v59  ;;  %v1293_v13 = vmul.f32 %v2148_v56, %v1292_v47 }
 0x948   :  { %vm1277_vm0 = vcmp.lt.f32.partialorder %v1276_v9, 0.0004427343 }
 0x949   :  { %v1275_v10 = vmul.f32 %v2150_v46, %v1274_v48 }
 0x94e   :  { %v2152_v1 = vpop.eup %2151 }
 0x94f   :  { %v1281_v50 = vmul.f32 0.6931472, %v2152_v1 }
 0x950   :  { %v2154_v4 = vpop.eup %2153 }
 0x951   :  { %v1263_v44 = vmul.f32 0.6931472, %v2154_v4  ;;  %v1287_v0 = vsel %vm2675_vm13, %v1284_v51, %v1281_v50 }
 0x952   :  { %v2156_v55 = vpop.eup %2155  ;;  %v1299_v45 = vsel %vm1247_vm5, %v2657_v30, %v1287_v0 }
 0x953   :  { %v1290_v29 = vmul.f32 0.6931472, %v2156_v55  ;;  %v1269_v41 = vsel %vm2679_vm14, %v1266_v24, %v1263_v44 }
 0x954   :  { %v2158_v12 = vpop.eup %2157  ;;  %v1297_v22 = vsel %vm1245_vm2, %v2663_v53, %v1269_v41 }
 0x955   :  { %v1272_v6 = vmul.f32 0.6931472, %v2158_v12  ;;  %v1296_v20 = vsel %vm1295_vm15, %v1293_v13, %v1290_v29 }
 0x956   :  { %v1300_v17 = vsel %vm1248_vm1, %v2668_v25, %v1296_v20 }
 0x957   :  { %v1278_v16 = vsel %vm1277_vm0, %v1275_v10, %v1272_v6  ;;  %v1302_v33 = vpack.c.bf16 %v1300_v17, %v1299_v45 }
 0x958   :  { %v1298_v26 = vsel %vm1246_vm3, %v2672_v49, %v1278_v16 }
 0x959   :  { %v1301_v40 = vpack.c.bf16 %v1298_v26, %v1297_v22 }
 0x95b   :  { %1958 = vmatprep.mubr.msk.bf16.mxu1 %vm173_vm4, %v1301_v40 }
 0x95c   :  { %1959 = vmatmul.mubr.msk.bf16.vlgmr.msra.gmra.mxu1 %vm173_vm4, %v1302_v33 }
 0x95d   :  { %1971 = vmatpush3.bf16.msra.mxu1 %v2547_v19 }
 0x95e   :  { %1972 = vmatprep.subr.bf16.mxu1 %v2553_v31 }
 0x961   :  { %1973 = vmatpush3.bf16.msra.mxu1 %v2553_v31 }
 0xa1c   :  { %v1960_v37 = vpop.f32.mrf.mxu1 }
 0xa1d   :  { %v2701_v39 = vadd.f32 %v2598_v54, %v1960_v37 }
 0xa1e   :  { %v1343_v14 = vpop.f32.mrf.mxu1 }
 0xa1f   :  { %v1360_v18 = vmul.f32 0.5, %v2701_v39  ;;  %v2705_v21 = vadd.f32 %v2598_v54, %v1343_v14 }
 0xa20   :  { %v1961_v15 = vpop.f32.mrf.mxu1 }
 0xa21   :  { %v2708_v43 = vadd.f32 %v1360_v18, %v2657_v30  ;;  %v1358_v27 = vmul.f32 0.5, %v2705_v21  ;;  %v2712_v32 = vadd.f32 %v2598_v54, %v1961_v15 }
 0xa22   :  { %v1346_v34 = vpop.f32.mrf.mxu1 }
 0xa23   :  { %v1372_v8 = vmin.f32 %v2708_v43, 20.0  ;;  %v2716_v52 = vadd.f32 %v1358_v27, %v2663_v53  ;;  %v1361_v23 = vmul.f32 0.5, %v2712_v32  ;;  %v2720_v36 = vadd.f32 %v2598_v54, %v1346_v34 }
 0xa24   :  { %vm1368_vm13 = vcmp.gt.f32.partialorder %v2708_v43, 20.0 }
 0xa25   :  { %v1378_v57 = vmul.f32 1.442695, %v1372_v8  ;;  %v1370_v58 = vmin.f32 %v2716_v52, 20.0  ;;  %v1365_v42 = vadd.f32 %v1361_v23, %v2668_v25  ;;  %v1359_v56 = vmul.f32 0.5, %v2720_v36 }
 0xa26   :  { %vm1366_vm11 = vcmp.gt.f32.partialorder %v2716_v52, 20.0 }
 0xa27   :  { %2159 = vpow2.f32 %v1378_v57  ;;  %v1374_v60 = vmul.f32 1.442695, %v1370_v58  ;;  %v1373_v46 = vmin.f32 %v1365_v42, 20.0  ;;  %v1363_v62 = vadd.f32 %v1359_v56, %v2672_v49 }
 0xa28   :  { %vm1369_vm9 = vcmp.gt.f32.partialorder %v1365_v42, 20.0 }
 0xa29   :  { %2161 = vpow2.f32 %v1374_v60  ;;  %v1380_v28 = vmul.f32 1.442695, %v1373_v46  ;;  %v1371_v63 = vmin.f32 %v1363_v62, 20.0  ;;  %vm1367_vm12 = vcmp.gt.f32.partialorder %v1363_v62, 20.0 }
 0xa2b   :  { %2163 = vpow2.f32 %v1380_v28  ;;  %v1376_v61 = vmul.f32 1.442695, %v1371_v63 }
 0xa2d   :  { %2165 = vpow2.f32 %v1376_v61 }
 0xa34   :  { %v2160_v59 = vpop.eup %2159 }
 0xa35   :  { %v1400_v1 = vadd.f32 1.0, %v2160_v59  ;;  %v1403_v7 = vmul.f32 -0.5, %v2160_v59  ;;  %v1406_v13 = vand.u32 2147483647, %v2160_v59 }
 0xa36   :  { %v2162_v2 = vpop.eup %2161 }
 0xa37   :  { %v1382_v3 = vadd.f32 1.0, %v2162_v2  ;;  %2167 = vlog2.f32 %v1400_v1  ;;  %v1385_v48 = vmul.f32 -0.5, %v2162_v2  ;;  %v1404_v35 = vadd.f32 1.0, %v1403_v7 }
 0xa38   :  { %v2164_v4 = vpop.eup %2163  ;;  %v1388_v51 = vand.u32 2147483647, %v2162_v2  ;;  %vm1407_vm8 = vcmp.lt.f32.partialorder %v1406_v13, 0.0004427343 }
 0xa39   :  { %v1409_v38 = vadd.f32 1.0, %v2164_v4  ;;  %2169 = vlog2.f32 %v1382_v3  ;;  %v1412_v44 = vmul.f32 -0.5, %v2164_v4  ;;  %v1415_v24 = vand.u32 2147483647, %v2164_v4 }
 0xa3a   :  { %v2166_v5 = vpop.eup %2165  ;;  %v1386_v11 = vadd.f32 1.0, %v1385_v48  ;;  %v1405_v26 = vmul.f32 %v2160_v59, %v1404_v35  ;;  %vm1389_vm7 = vcmp.lt.f32.partialorder %v1388_v51, 0.0004427343 }
 0xa3b   :  { %2171 = vlog2.f32 %v1409_v38  ;;  %v1391_v47 = vadd.f32 1.0, %v2166_v5  ;;  %v1394_v9 = vmul.f32 -0.5, %v2166_v5  ;;  %v1413_v50 = vadd.f32 1.0, %v1412_v44 }
 0xa3c   :  { %v1397_v16 = vand.u32 2147483647, %v2166_v5  ;;  %vm1416_vm6 = vcmp.lt.f32.partialorder %v1415_v24, 0.0004427343  ;;  %v1387_v17 = vmul.f32 %v2162_v2, %v1386_v11 }
 0xa3d   :  { %2173 = vlog2.f32 %v1391_v47  ;;  %v1395_v6 = vadd.f32 1.0, %v1394_v9  ;;  %v1414_v20 = vmul.f32 %v2164_v4, %v1413_v50 }
 0xa3e   :  { %vm1398_vm10 = vcmp.lt.f32.partialorder %v1397_v16, 0.0004427343 }
 0xa3f   :  { %v1396_v37 = vmul.f32 %v2166_v5, %v1395_v6 }
 0xa44   :  { %v2168_v55 = vpop.eup %2167 }
 0xa45   :  { %v1402_v10 = vmul.f32 0.6931472, %v2168_v55 }
 0xa46   :  { %v2170_v12 = vpop.eup %2169 }
 0xa47   :  { %v1384_v41 = vmul.f32 0.6931472, %v2170_v12  ;;  %v1408_v14 = vsel %vm1407_vm8, %v1405_v26, %v1402_v10 }
 0xa48   :  { %v2172_v29 = vpop.eup %2171  ;;  %v1420_v8 = vsel %vm1368_vm13, %v2708_v43, %v1408_v14 }
 0xa49   :  { %v1411_v0 = vmul.f32 0.6931472, %v2172_v29  ;;  %v1390_v45 = vsel %vm1389_vm7, %v1387_v17, %v1384_v41 }
 0xa4a   :  { %v2174_v22 = vpop.eup %2173  ;;  %v1418_v27 = vsel %vm1366_vm11, %v2716_v52, %v1390_v45 }
 0xa4b   :  { %v1417_v40 = vsel %vm1416_vm6, %v1414_v20, %v1411_v0  ;;  %v1393_v33 = vmul.f32 0.6931472, %v2174_v22 }
 0xa4c   :  { %v1421_v18 = vsel %vm1369_vm9, %v1365_v42, %v1417_v40 }
 0xa4d   :  { %v1399_v15 = vsel %vm1398_vm10, %v1396_v37, %v1393_v33  ;;  %v1423_v57 = vpack.c.bf16 %v1421_v18, %v1420_v8 }
 0xa4e   :  { %v1419_v34 = vsel %vm1367_vm12, %v1363_v62, %v1399_v15 }
 0xa4f   :  { %v1422_v23 = vpack.c.bf16 %v1419_v34, %v1418_v27 }
 0xa51   :  { %1966 = vmatprep.mubr.msk.bf16.mxu0 %vm173_vm4, %v1422_v23 }
 0xa52   :  { %1967 = vmatmul.mubr.msk.bf16.vlgmr.msra.gmra.mxu0 %vm173_vm4, %v1423_v57 }
 0xa53   :  { %1979 = vmatpush3.bf16.msra.mxu0 %v2547_v19 }
 0xa54   :  { %1980 = vmatprep.subr.bf16.mxu0 %v2553_v31 }
 0xa57   :  { %1981 = vmatpush3.bf16.msra.mxu0 %v2553_v31 }
 0xb12   :  { %v1968_v58 = vpop.f32.mrf.mxu0 }
 0xb13   :  { %v2736_v42 = vadd.f32 %v2598_v54, %v1968_v58 }
 0xb14   :  { %v1464_v52 = vpop.f32.mrf.mxu0 }
 0xb15   :  { %v1489_v56 = vmul.f32 0.5, %v2736_v42  ;;  %v2740_v43 = vadd.f32 %v2598_v54, %v1464_v52 }
 0xb16   :  { %v1969_v60 = vpop.f32.mrf.mxu0 }
 0xb17   :  { %v2743_v46 = vadd.f32 %v1489_v56, %v2657_v30  ;;  %v1487_v19 = vmul.f32 0.5, %v2740_v43  ;;  %v2747_v62 = vadd.f32 %v2598_v54, %v1969_v60 }
 0xb18   :  { %v1467_v31 = vpop.f32.mrf.mxu0 }
 0xb19   :  { %v1501_v28 = vmin.f32 %v2743_v46, 20.0  ;;  %v2751_v63 = vadd.f32 %v1487_v19, %v2663_v53  ;;  %v1490_v61 = vmul.f32 0.5, %v2747_v62  ;;  %v2755_v59 = vadd.f32 %v2598_v54, %v1467_v31 }
 0xb1a   :  { %vm1497_vm6 = vcmp.gt.f32.partialorder %v2743_v46, 20.0 }
 0xb1b   :  { %v1507_v1 = vmul.f32 1.442695, %v1501_v28  ;;  %v1499_v2 = vmin.f32 %v2751_v63, 20.0  ;;  %v1494_v3 = vadd.f32 %v1490_v61, %v2668_v25  ;;  %v1488_v4 = vmul.f32 0.5, %v2755_v59 }
 0xb1c   :  { %vm1495_vm3 = vcmp.gt.f32.partialorder %v2751_v63, 20.0 }
 0xb1d   :  { %2175 = vpow2.f32 %v1507_v1  ;;  %v1503_v38 = vmul.f32 1.442695, %v1499_v2  ;;  %v1502_v5 = vmin.f32 %v1494_v3, 20.0  ;;  %v1492_v47 = vadd.f32 %v1488_v4, %v2672_v49 }
 0xb1e   :  { %vm1498_vm1 = vcmp.gt.f32.partialorder %v1494_v3, 20.0 }
 0xb1f   :  { %2177 = vpow2.f32 %v1503_v38  ;;  %v1509_v44 = vmul.f32 1.442695, %v1502_v5  ;;  %v1500_v48 = vmin.f32 %v1492_v47, 20.0  ;;  %vm1496_vm5 = vcmp.gt.f32.partialorder %v1492_v47, 20.0 }
 0xb20   :  { %v1481_v38 = vmul.f32 2.0, %v2736_v42 }
 0xb21   :  { %2179 = vpow2.f32 %v1509_v44  ;;  %v1505_v7 = vmul.f32 1.442695, %v1500_v48  ;;  %v1479_v44 = vmul.f32 2.0, %v2740_v43 }
 0xb23   :  { %2181 = vpow2.f32 %v1505_v7  ;;  %v1482_v7 = vmul.f32 2.0, %v2747_v62  ;;  %v1483_v43 = vadd.f32 %v1479_v44, %v2705_v21 }
 0xb2a   :  { %v2176_v9 = vpop.eup %2175 }
 0xb2b   :  { %v1529_v55 = vadd.f32 1.0, %v2176_v9  ;;  %v1532_v41 = vmul.f32 -0.5, %v2176_v9  ;;  %v1535_v45 = vand.u32 2147483647, %v2176_v9 }
 0xb2c   :  { %v2178_v50 = vpop.eup %2177 }
 0xb2d   :  { %v1511_v24 = vadd.f32 1.0, %v2178_v50  ;;  %v1514_v13 = vmul.f32 -0.5, %v2178_v50  ;;  %v1533_v22 = vadd.f32 1.0, %v1532_v41  ;;  %v1517_v26 = vand.u32 2147483647, %v2178_v50 }
 0xb2e   :  { %v2180_v11 = vpop.eup %2179  ;;  %vm1536_vm0 = vcmp.lt.f32.partialorder %v1535_v45, 0.0004427343 }
 0xb2f   :  { %2183 = vlog2.f32 %v1511_v24  ;;  %v1538_v12 = vadd.f32 1.0, %v2180_v11  ;;  %v1541_v29 = vmul.f32 -0.5, %v2180_v11  ;;  %v1544_v16 = vand.u32 2147483647, %v2180_v11 }
 0xb30   :  { %2185 = vlog2.f32 %v1529_v55  ;;  %v2182_v35 = vpop.eup %2181  ;;  %v1515_v17 = vadd.f32 1.0, %v1514_v13  ;;  %v1534_v23 = vmul.f32 %v2176_v9, %v1533_v22  ;;  %vm1518_vm15 = vcmp.lt.f32.partialorder %v1517_v26, 0.0004427343 }
 0xb31   :  { %2187 = vlog2.f32 %v1538_v12  ;;  %v1520_v51 = vadd.f32 1.0, %v2182_v35  ;;  %v1523_v6 = vmul.f32 -0.5, %v2182_v35  ;;  %v1542_v0 = vadd.f32 1.0, %v1541_v29 }
 0xb32   :  { %v1526_v27 = vand.u32 2147483647, %v2182_v35  ;;  %vm1545_vm14 = vcmp.lt.f32.partialorder %v1544_v16, 0.0004427343  ;;  %v1516_v34 = vmul.f32 %v2178_v50, %v1515_v17  ;;  %v1485_v9 = vadd.f32 %v1481_v38, %v2701_v39 }
 0xb33   :  { %2189 = vlog2.f32 %v1520_v51  ;;  %v1524_v37 = vadd.f32 1.0, %v1523_v6  ;;  %v1543_v15 = vmul.f32 %v2180_v11, %v1542_v0  ;;  %v1480_v50 = vmul.f32 2.0, %v2755_v59 }
 0xb34   :  { %vm1527_vm2 = vcmp.lt.f32.partialorder %v1526_v27, 0.0004427343  ;;  %v1486_v51 = vadd.f32 %v1482_v7, %v2712_v32 }
 0xb35   :  { %v1525_v56 = vmul.f32 %v2182_v35, %v1524_v37  ;;  %v1484_v13 = vadd.f32 %v1480_v50, %v2720_v36 }
 0xb3c   :  { %v2184_v10 = vpop.eup %2183 }
 0xb3d   :  { %v2186_v20 = vpop.eup %2185  ;;  %v1513_v33 = vmul.f32 0.6931472, %v2184_v10 }
 0xb3e   :  { %v2188_v40 = vpop.eup %2187  ;;  %v1531_v14 = vmul.f32 0.6931472, %v2186_v20 }
 0xb3f   :  { %v1540_v18 = vmul.f32 0.6931472, %v2188_v40  ;;  %v1519_v58 = vsel %vm1518_vm15, %v1516_v34, %v1513_v33  ;;  %vm1781_vm15 = vcmask 523264  }
 0xb40   :  { %v2190_v8 = vpop.eup %2189  ;;  %v1537_v60 = vsel %vm1536_vm0, %v1534_v23, %v1531_v14  ;;  %v1547_v28 = vsel %vm1495_vm3, %v2751_v63, %v1519_v58  ;;  %vm1786_vm0 = vcmask 785408  }
 0xb41   :  { %v1546_v57 = vsel %vm1545_vm14, %v1543_v15, %v1540_v18  ;;  %v1522_v52 = vmul.f32 0.6931472, %v2190_v8  ;;  %v1549_v1 = vsel %vm1497_vm6, %v2743_v46, %v1537_v60 }
 0xb42   :  { %v1550_v19 = vsel %vm1498_vm1, %v1494_v3, %v1546_v57 }
 0xb43   :  { %v1528_v31 = vsel %vm1527_vm2, %v1525_v56, %v1522_v52  ;;  %v1552_v4 = vpack.c.bf16 %v1550_v19, %v1549_v1 }
 0xb44   :  { %v1548_v61 = vsel %vm1496_vm5, %v1492_v47, %v1528_v31 }
 0xb45   :  { %v1551_v2 = vpack.c.bf16 %v1548_v61, %v1547_v28 }
 0xb47   :  { %1974 = vmatprep.mubr.msk.bf16.mxu1 %vm173_vm4, %v1551_v2 }
 0xb48   :  { %1975 = vmatmul.mubr.msk.bf16.vlgmr.msra.gmra.mxu1 %vm173_vm4, %v1552_v4 }
 0xc08   :  { %v1976_v5 = vpop.f32.mrf.mxu1 }
 0xc09   :  { %v1602_v3 = vadd.f32 %v2598_v54, %v1976_v5 }
 0xc0a   :  { %v1593_v48 = vpop.f32.mrf.mxu1 }
 0xc0b   :  { %v1610_v63 = vmul.f32 2.0, %v1602_v3  ;;  %v2772_v47 = vadd.f32 %v1602_v3, %v2657_v30  ;;  %v1594_v46 = vadd.f32 %v2598_v54, %v1593_v48 }
 0xc0c   :  { %v1977_v55 = vpop.f32.mrf.mxu1 }
 0xc0d   :  { %v1626_v42 = vmin.f32 %v2772_v47, 20.0  ;;  %v1608_v24 = vmul.f32 2.0, %v1594_v46  ;;  %v2779_v11 = vadd.f32 %v1594_v46, %v2663_v53  ;;  %v1605_v62 = vadd.f32 %v2598_v54, %v1977_v55 }
 0xc0e   :  { %v1596_v12 = vpop.f32.mrf.mxu1  ;;  %v2783_v35 = vadd.f32 %v1610_v63, %v1485_v9  ;;  %vm1622_vm14 = vcmp.gt.f32.partialorder %v2772_v47, 20.0 }
 0xc0f   :  { %v1632_v29 = vmul.f32 1.442695, %v1626_v42  ;;  %v1624_v39 = vmin.f32 %v2779_v11, 20.0  ;;  %v1597_v59 = vadd.f32 %v2598_v54, %v1596_v12  ;;  %v1611_v41 = vmul.f32 2.0, %v1605_v62 }
 0xc10   :  { %v1619_v6 = vadd.f32 %v1605_v62, %v2668_v25  ;;  %v2790_v10 = vadd.f32 %v1608_v24, %v1483_v43  ;;  %vm1620_vm12 = vcmp.gt.f32.partialorder %v2779_v11, 20.0 }
 0xc11   :  { %2191 = vpow2.f32 %v1632_v29  ;;  %v1628_v21 = vmul.f32 1.442695, %v1624_v39  ;;  %v1609_v0 = vmul.f32 2.0, %v1597_v59  ;;  %v1617_v20 = vadd.f32 %v1597_v59, %v2672_v49 }
 0xc12   :  { %v1627_v16 = vmin.f32 %v1619_v6, 20.0  ;;  %v2793_v17 = vadd.f32 %v1611_v41, %v1486_v51  ;;  %vm1623_vm10 = vcmp.gt.f32.partialorder %v1619_v6, 20.0 }
 0xc13   :  { %2193 = vpow2.f32 %v1628_v21  ;;  %v1625_v32 = vmin.f32 %v1617_v20, 20.0  ;;  %v2795_v22 = vadd.f32 %v1609_v0, %v1484_v13  ;;  %vm1621_vm13 = vcmp.gt.f32.partialorder %v1617_v20, 20.0 }
 0xc14   :  { %v1634_v26 = vmul.f32 1.442695, %v1627_v16 }
 0xc15   :  { %v1630_v40 = vmul.f32 1.442695, %v1625_v32 }
 0xc16   :  { %2195 = vpow2.f32 %v1634_v26 }
 0xc17   :  { %2197 = vpow2.f32 %v1630_v40 }
 0xc1e   :  { %v2192_v36 = vpop.eup %2191 }
 0xc1f   :  { %v1654_v45 = vadd.f32 1.0, %v2192_v36  ;;  %v1657_v8 = vmul.f32 -0.5, %v2192_v36  ;;  %v1660_v52 = vand.u32 2147483647, %v2192_v36 }
 0xc20   :  { %v2194_v33 = vpop.eup %2193 }
 0xc21   :  { %v1636_v37 = vadd.f32 1.0, %v2194_v33  ;;  %2199 = vlog2.f32 %v1654_v45  ;;  %v1639_v34 = vmul.f32 -0.5, %v2194_v33  ;;  %v1658_v19 = vadd.f32 1.0, %v1657_v8 }
 0xc22   :  { %v1642_v31 = vand.u32 2147483647, %v2194_v33  ;;  %vm2797_vm7 = vcmp.lt.f32.partialorder %v1660_v52, 0.0004427343 }
 0xc23   :  { %v2196_v14 = vpop.eup %2195  ;;  %2201 = vlog2.f32 %v1636_v37  ;;  %v1640_v56 = vadd.f32 1.0, %v1639_v34  ;;  %v1659_v7 = vmul.f32 %v2192_v36, %v1658_v19 }
 0xc24   :  { %v2198_v18 = vpop.eup %2197  ;;  %v1663_v15 = vadd.f32 1.0, %v2196_v14  ;;  %v1666_v23 = vmul.f32 -0.5, %v2196_v14  ;;  %v1669_v1 = vand.u32 2147483647, %v2196_v14  ;;  %vm2801_vm8 = vcmp.lt.f32.partialorder %v1642_v31, 0.0004427343 }
 0xc25   :  { %v1645_v27 = vadd.f32 1.0, %v2198_v18  ;;  %v1648_v57 = vmul.f32 -0.5, %v2198_v18  ;;  %v1651_v38 = vand.u32 2147483647, %v2198_v18  ;;  %v1641_v44 = vmul.f32 %v2194_v33, %v1640_v56 }
 0xc26   :  { %2203 = vlog2.f32 %v1663_v15  ;;  %v1667_v28 = vadd.f32 1.0, %v1666_v23  ;;  %vm1670_vm9 = vcmp.lt.f32.partialorder %v1669_v1, 0.0004427343 }
 0xc27   :  { %2205 = vlog2.f32 %v1645_v27  ;;  %v1649_v2 = vadd.f32 1.0, %v1648_v57  ;;  %vm1652_vm11 = vcmp.lt.f32.partialorder %v1651_v38, 0.0004427343  ;;  %v1756_v27 = vpop.permute.xlu0 %1755 }
 0xc28   :  { %v1668_v9 = vmul.f32 %v2196_v14, %v1667_v28 }
 0xc29   :  { %v1650_v42 = vmul.f32 %v2198_v18, %v1649_v2 }
 0xc2e   :  { %v2200_v58 = vpop.eup %2199 }
 0xc2f   :  { %v1656_v4 = vmul.f32 0.6931472, %v2200_v58 }
 0xc30   :  { %v2202_v60 = vpop.eup %2201 }
 0xc31   :  { %v1638_v61 = vmul.f32 0.6931472, %v2202_v60  ;;  %v1662_v24 = vsel %vm2797_vm7, %v1659_v7, %v1656_v4 }
 0xc32   :  { %v1674_v39 = vsel %vm1622_vm14, %v2772_v47, %v1662_v24 }
 0xc33   :  { %v2204_v5 = vpop.eup %2203  ;;  %v1644_v50 = vsel %vm2801_vm8, %v1641_v44, %v1638_v61 }
 0xc34   :  { %v2206_v48 = vpop.eup %2205  ;;  %v1665_v46 = vmul.f32 0.6931472, %v2204_v5  ;;  %v1672_v51 = vsel %vm1620_vm12, %v2779_v11, %v1644_v50 }
 0xc35   :  { %v1647_v55 = vmul.f32 0.6931472, %v2206_v48 }
 0xc36   :  { %v1671_v43 = vsel %vm1670_vm9, %v1668_v9, %v1665_v46 }
 0xc37   :  { %v1675_v62 = vsel %vm1623_vm10, %v1619_v6, %v1671_v43  ;;  %v1653_v12 = vsel %vm1652_vm11, %v1650_v42, %v1647_v55 }
 0xc38   :  { %v1673_v29 = vsel %vm1621_vm13, %v1617_v20, %v1653_v12  ;;  %v1677_v13 = vpack.c.bf16 %v1675_v62, %v1674_v39 }
 0xc39   :  { %v1676_v59 = vpack.c.bf16 %v1673_v29, %v1672_v51 }
 0xc3b   :  { %1982 = vmatprep.mubr.msk.bf16.mxu0 %vm173_vm4, %v1676_v59 }
 0xc3c   :  { %1983 = vmatmul.mubr.msk.bf16.vlgmr.msra.gmra.mxu0 %vm173_vm4, %v1677_v13 }
 0xcfc   :  { %v1984_v41 = vpop.f32.mrf.mxu0 }
 0xcfd   :  { %v1727_v21 = vadd.f32 %v2598_v54, %v1984_v41 }
 0xcfe   :  { %v1718_v0 = vpop.f32.mrf.mxu0 }
 0xcff   :  { %v1719_v6 = vadd.f32 %v2598_v54, %v1718_v0  ;;  %v1735_v32 = vadd.f32 %v1727_v21, %v2783_v35 }
 0xd00   :  { %v1985_v16 = vpop.f32.mrf.mxu0 }
 0xd01   :  { %v1733_v11 = vadd.f32 %v1719_v6, %v2790_v10  ;;  %v1730_v20 = vadd.f32 %v2598_v54, %v1985_v16  ;;  %v1739_v36 = vmul.f32 0.16666667, %v1735_v32 }
 0xd02   :  { %v1721_v47 = vpop.f32.mrf.mxu0 }
 0xd03   :  { %v1737_v26 = vmul.f32 0.16666667, %v1733_v11  ;;  %v1722_v40 = vadd.f32 %v2598_v54, %v1721_v47  ;;  %v1736_v45 = vadd.f32 %v1730_v20, %v2793_v17  ;;  %v1743_v10 = vadd.f32 %v1739_v36, %v2657_v30  ;;  %v1754_v54 = vpop.permute.xlu1 %1753 }
 0xd04   :  { %v1779_v52 = vsel %vm173_vm4, %v1754_v54, %v2657_v30 }
 0xd05   :  { %v1734_v33 = vadd.f32 %v1722_v40, %v2795_v22  ;;  %v1741_v37 = vadd.f32 %v1737_v26, %v2663_v53  ;;  %v1740_v18 = vmul.f32 0.16666667, %v1736_v45  ;;  %v1752_v22 = vpop.permute.xlu0 %1751 }
 0xd06   :  { %v1778_v57 = vsel %vm173_vm4, %v1752_v22, %v2672_v49 }
 0xd07   :  { %v1738_v14 = vmul.f32 0.16666667, %v1734_v33  ;;  %1765 = vrot.lane.b32.xlu1 %v1741_v37, %s2213_s3  ;;  %v1744_v15 = vadd.f32 %v1740_v18, %v2668_v25  ;;  %v1750_v17 = vpop.permute.xlu1 %1749 }
 0xd08   :  { %v1777_v34 = vsel %vm173_vm4, %v1750_v17, %v2663_v53 }
 0xd09   :  { %v1742_v35 = vadd.f32 %v1738_v14, %v2672_v49  ;;  %v1780_v49 = vsel %vm173_vm4, %v1756_v27, %v2668_v25 }
 0xd0b   :  { %1767 = vrot.lane.b32.xlu0 %v1742_v35, %s2213_s3  ;;  %1769 = vrot.lane.b32.xlu1 %v1743_v10, %s2213_s3 }
 0xd0f   :  { %1771 = vrot.lane.b32.xlu0 %v1744_v15, %s2213_s3 }
 0xd79   :  { %v1766_v8 = vpop.permute.xlu1 %1765 }
 0xd7a   :  { %v1782_v23 = vsel %vm1781_vm15, %v1777_v34, %v1766_v8 }
 0xd7b   :  { %1787 = vst.msk [vmem:[%s2859_s4] sm:$0xff] %vm1786_vm0, %v1782_v23 }
 0xd7d   :  { %v1768_v58 = vpop.permute.xlu0 %1767  ;;  %v1770_v56 = vpop.permute.xlu1 %1769 }
 0xd7e   :  { %v1783_v60 = vsel %vm1781_vm15, %v1778_v57, %v1768_v58  ;;  %v1784_v53 = vsel %vm1781_vm15, %v1779_v52, %v1770_v56 }
 0xd7f   :  { %1788 = vst.msk [vmem:[%s2859_s4 + $0x8] sm:$0xff] %vm1786_vm0, %v1783_v60  ;;  %1789 = vst.msk [vmem:[%s2859_s4 + $0x10] sm:$0xff] %vm1786_vm0, %v1784_v53 }
 0xd81   :  { %v1772_v19 = vpop.permute.xlu0 %1771 }
 0xd82   :  { %v1785_v30 = vsel %vm1781_vm15, %v1780_v49, %v1772_v19 }
 0xd83   :  { %1790 = vst.msk [vmem:[%s2859_s4 + $0x18] sm:$0xff] %vm1786_vm0, %v1785_v30 }

</bundles_post_ra>
